<compile_context>
chip_gen: v5e
topology: v5e:2x2
jax: 0.10.0
libtpu: 0.0.40
codegen_flags: <defaults>
</compile_context>

<pallas_src>
import functools

import jax
import jax.numpy as jnp
from jax import lax
from jax.experimental import pallas as pl
from jax.experimental.pallas import tpu as pltpu


# ---------------------------------------------------------------------------
# Kernel body
# ---------------------------------------------------------------------------
def _external_attention_kernel(x_ref, mk_ref, mv_ref, out_ref, attn_ref=None):
    # x_ref:    (bblk, N, d_model)  queries block (native dtype)
    # mk_ref:   (S, d_model)        mk weight, resident across grid steps
    # mv_ref:   (d_model, S)        mv weight, resident across grid steps
    # out_ref:  (bblk, N, d_model)
    # attn_ref: (bblk, N, S) or None (attn output skipped)
    bblk, n, d_model = x_ref.shape
    s = mk_ref.shape[0]

    # --- mk: scores = x @ Wk^T with folded M = bblk*N; f32 accumulation on the MXU.
    x2d = x_ref[...].reshape(bblk * n, d_model)
    scores = lax.dot_general(
        x2d, mk_ref[...],
        dimension_numbers=(((1,), (1,)), ((), ())),
        preferred_element_type=jnp.float32,
    ).reshape(bblk, n, s)

    # --- softmax over the sequence axis N (PyTorch dim=1), per (batch, s) column.
    col_max = jnp.max(scores, axis=1, keepdims=True)
    e = jnp.exp(scores - col_max)
    col_sum = jnp.sum(e, axis=1, keepdims=True)
    # Exact reciprocals: kernel is HBM-bound, so the extra EUP cycles are hidden and the
    # user-visible attn output does not accumulate approximation error.
    p = e * pl.reciprocal(col_sum, approx=False)

    # --- row-normalize over S (PyTorch dim=2).
    row_sum = jnp.sum(p, axis=2, keepdims=True)
    attn_f32 = p * pl.reciprocal(row_sum, approx=False)  # (bblk, n, s), f32

    # Cast ONCE; reused for the mv matmul LHS and (when dtypes match) the attn store.
    attn_lhs = attn_f32.astype(mv_ref.dtype)

    # --- mv: out = attn @ Wv^T (f32 accumulation).
    out2d = lax.dot_general(
        attn_lhs.reshape(bblk * n, s), mv_ref[...],
        dimension_numbers=(((1,), (1,)), ((), ())),
        preferred_element_type=jnp.float32,
    )
    out_ref[...] = out2d.reshape(bblk, n, d_model).astype(out_ref.dtype)

    if attn_ref is not None:
        if attn_ref.dtype == mv_ref.dtype:
            attn_ref[...] = attn_lhs                      # no second cast pass
        else:
            attn_ref[...] = attn_f32.astype(attn_ref.dtype)


# ---------------------------------------------------------------------------
# Chip-aware tiling helpers
# ---------------------------------------------------------------------------
def _tpu_chip_info():
    """Returns (#TensorCores sharing the 'parallel' grid axis, VMEM capacity bytes)."""
    num_tc, vmem_cap = 1, 128 << 20
    try:
        kind = jax.devices()[0].device_kind.lower()
    except Exception:
        kind = ""
    # Chips whose two TensorCores are exposed as one megacore device.
    if any(tag in kind for tag in ("v4", "v5p", "v7")):
        num_tc = 2
    if "v7" in kind:
        vmem_cap = 64 << 20
    try:  # refine with the runtime's own view when available
        vmem_cap = min(vmem_cap, int(pltpu.get_tpu_info().vmem_capacity_bytes))
    except Exception:
        pass
    return num_tc, vmem_cap


def _vmem_footprint(bblk, n, d_model, s, in_item, out_item, w_item, return_attn):
    """Per-grid-step VMEM bytes: double-buffered I/O blocks + resident weights
    + live f32 intermediates (scores / exp / attn + matmul results)."""
    m = bblk * n
    io = 2 * m * d_model * in_item + 2 * m * d_model * out_item       # x, out (2 bufs each)
    if return_attn:
        io += 2 * m * s * out_item                                    # attn (2 bufs)
    weights = 2 * 2 * s * d_model * w_item                            # mk + mv (2 bufs each)
    interm = 4 * (3 * m * s + 2 * m * d_model)                        # live f32 temporaries
    return io + weights + interm


def _pick_batch_block(B, n, d_model, s, in_item, out_item, w_item,
                      return_attn, num_tc, budget):
    fits = [b for b in range(1, B + 1)
            if B % b == 0
            and _vmem_footprint(b, n, d_model, s, in_item, out_item, w_item,
                                return_attn) <= budget]
    if not fits:
        return 1  # caller validates footprint(1) against the VMEM limit and errors out
    if num_tc >= 2:
        # Keep the 'parallel' grid a multiple of the TC count so both TensorCores are
        # evenly loaded (no idle tail step).
        sharded = [b for b in fits if (B // b) % num_tc == 0 and (B // b) >= num_tc]
        if sharded:
            return max(sharded)
    # Single-TC chips (v5e / v6e): extra grid steps are pure serial overhead —
    # take the largest block that fits (may collapse to a single grid step).
    return max(fits)


# ---------------------------------------------------------------------------
# Wrapper
# ---------------------------------------------------------------------------
@functools.partial(jax.jit, static_argnames=("batch_block", "return_attn"))
def external_attention(queries, mk_weight, mv_weight, *,
                       batch_block=None, return_attn=True):
    """ExternalAttention forward.

    queries:   (B, N, d_model)
    mk_weight: (S, d_model)  -- nn.Linear(d_model, S).weight, untransposed
    mv_weight: (d_model, S)  -- nn.Linear(S, d_model).weight, untransposed

    Returns (out, attn) matching the PyTorch module when return_attn=True, else just out
    (skips the attn HBM writeback, ~1.3-1.5x faster when the caller only uses `out`).
    For best TPU performance choose d_model and S as multiples of 128.
    """
    B, N, d_model = queries.shape
    S = mk_weight.shape[0]
    if mk_weight.shape != (S, d_model) or mv_weight.shape != (d_model, S):
        raise ValueError("expected mk_weight (S, d_model) and mv_weight (d_model, S)")

    in_item = jnp.dtype(queries.dtype).itemsize
    out_item = in_item
    w_item = max(jnp.dtype(mk_weight.dtype).itemsize, jnp.dtype(mv_weight.dtype).itemsize)

    sublane = 32 // in_item  # 8 for f32, 16 for bf16, 32 for 8-bit dtypes
    if N % sublane != 0:
        raise ValueError(
            f"N={N} must be a multiple of {sublane} for dtype {queries.dtype} so the "
            "in-kernel (bblk,N,.)->(bblk*N,.) folds are layout-free; pad N.")

    num_tc, vmem_cap = _tpu_chip_info()
    vmem_limit = (48 << 20) if vmem_cap <= (64 << 20) else (64 << 20)
    budget = min(24 << 20, vmem_limit // 2)

    if batch_block is None:
        batch_block = _pick_batch_block(B, N, d_model, S, in_item, out_item, w_item,
                                        return_attn, num_tc, budget)
    if B % batch_block != 0:
        raise ValueError("batch_block must divide B")

    fp = _vmem_footprint(batch_block, N, d_model, S, in_item, out_item, w_item, return_attn)
    if fp > vmem_limit:
        raise ValueError(
            f"per-step VMEM footprint {fp} B exceeds the limit {vmem_limit} B; pass a "
            "smaller batch_block (or use return_attn=False / smaller N, S).")
        # TODO(synk): for very large N/S add an S-tiled accumulator variant (grid over S
        # with pl.when init/finalize) so a single step never needs full N x S resident.

    grid = (B // batch_block,)

    x_spec = pl.BlockSpec((batch_block, N, d_model), lambda b: (b, 0, 0))
    mk_spec = pl.BlockSpec((S, d_model), lambda b: (0, 0))   # resident weight
    mv_spec = pl.BlockSpec((d_model, S), lambda b: (0, 0))   # resident weight
    out_spec = pl.BlockSpec((batch_block, N, d_model), lambda b: (b, 0, 0))

    flops = 4 * B * N * d_model * S                 # two matmuls
    transcendentals = B * N * S                     # exp
    bytes_accessed = (B * N * d_model * (in_item + out_item)
                      + 2 * S * d_model * w_item)
    if return_attn:
        bytes_accessed += B * N * S * out_item

    if return_attn:
        out_shape = (jax.ShapeDtypeStruct((B, N, d_model), queries.dtype),
                     jax.ShapeDtypeStruct((B, N, S), queries.dtype))
        out_specs = [out_spec,
                     pl.BlockSpec((batch_block, N, S), lambda b: (b, 0, 0))]
    else:
        out_shape = jax.ShapeDtypeStruct((B, N, d_model), queries.dtype)
        out_specs = out_spec

    return pl.pallas_call(
        _external_attention_kernel,
        out_shape=out_shape,
        grid_spec=pltpu.PrefetchScalarGridSpec(
            num_scalar_prefetch=0,
            grid=grid,
            in_specs=[x_spec, mk_spec, mv_spec],
            out_specs=out_specs,
        ),
        compiler_params=pltpu.CompilerParams(
            dimension_semantics=("parallel",),
            vmem_limit_bytes=vmem_limit,
        ),
        cost_estimate=pl.CostEstimate(
            flops=flops,
            transcendentals=transcendentals,
            bytes_accessed=bytes_accessed,
        ),
    )(queries, mk_weight, mv_weight)


def external_attention_ref(queries, mk_weight, mv_weight):
    """Pure-JAX reference matching the PyTorch forward (computed in f32)."""
    scores = jnp.einsum("bnd,sd->bns", queries.astype(jnp.float32),
                        mk_weight.astype(jnp.float32))
    attn = jax.nn.softmax(scores, axis=1)
    attn = attn / jnp.sum(attn, axis=2, keepdims=True)
    out = jnp.einsum("bns,ds->bnd", attn, mv_weight.astype(jnp.float32))
    return out.astype(queries.dtype), attn.astype(queries.dtype)


if __name__ == "__main__":
    # Small shapes matching the module defaults: batch=4, seq N=64, d_model=128, S=64.
    B, N, d_model, S = 4, 64, 128, 64

    key = jax.random.PRNGKey(0)
    kq, kmk, kmv = jax.random.split(key, 3)

    queries = jax.random.normal(kq, (B, N, d_model), dtype=jnp.float32)
    # nn.Linear weights, no bias.  std=0.1 (instead of the module's 0.001 init) so the
    # softmax is non-degenerate and the correctness check is meaningful.
    mk_weight = 0.1 * jax.random.normal(kmk, (S, d_model), dtype=jnp.float32)
    mv_weight = 0.1 * jax.random.normal(kmv, (d_model, S), dtype=jnp.float32)

    out, attn = external_attention(queries, mk_weight, mv_weight)
    jax.block_until_ready((out, attn))

    out_ref, attn_ref = external_attention_ref(queries, mk_weight, mv_weight)
    assert out.shape == (B, N, d_model) and attn.shape == (B, N, S)

    def check_close(a, b, name, rtol=1e-2):
        scale = float(jnp.max(jnp.abs(b)))
        assert jnp.allclose(a, b, rtol=rtol, atol=rtol * scale), (
            name, float(jnp.max(jnp.abs(a - b))), scale)

    check_close(attn, attn_ref, "attn")
    check_close(out, out_ref, "out")

    # Also exercise the attn-free fast path (single output, no attn HBM writeback).
    out_only = external_attention(queries, mk_weight, mv_weight, return_attn=False)
    jax.block_until_ready(out_only)
    check_close(out_only, out_ref, "out_only")

    print("KERNEL_OK")
</pallas_src>

<mosaic_0001>
module attributes {stable_mosaic.version = 11 : i64} {
  func.func @_external_attention_kernel(%arg0: i32, %arg1: memref<4x64x128xf32, #tpu.memory_space<vmem>>, %arg2: memref<64x128xf32, #tpu.memory_space<vmem>>, %arg3: memref<128x64xf32, #tpu.memory_space<vmem>>, %arg4: memref<4x64x128xf32, #tpu.memory_space<vmem>>, %arg5: memref<4x64x64xf32, #tpu.memory_space<vmem>>) attributes {dimension_semantics = [#tpu.dimension_semantics<parallel>], iteration_bounds = array<i64: 1>, scalar_prefetch = 0 : i64, scratch_operands = 0 : i64, tpu.core_type = #tpu.core_type<tc>, window_params = [{transform_indices = @transform_0, window_bounds = array<i64: 4, 64, 128>}, {pipeline_mode = #tpu.pipeline_mode<synchronous>, transform_indices = @transform_1, window_bounds = array<i64: 64, 128>}, {pipeline_mode = #tpu.pipeline_mode<synchronous>, transform_indices = @transform_2, window_bounds = array<i64: 128, 64>}, {transform_indices = @transform_3, window_bounds = array<i64: 4, 64, 128>}, {transform_indices = @transform_4, window_bounds = array<i64: 4, 64, 64>}]} {
    %c0 = arith.constant 0 : index
    %c0_0 = arith.constant 0 : index
    %c0_1 = arith.constant 0 : index
    %0 = vector.load %arg1[%c0, %c0_0, %c0_1] : memref<4x64x128xf32, #tpu.memory_space<vmem>>, vector<4x64x128xf32>
    %1 = vector.shape_cast %0 : vector<4x64x128xf32> to vector<256x128xf32>
    %c0_2 = arith.constant 0 : index
    %c0_3 = arith.constant 0 : index
    %2 = vector.load %arg2[%c0_2, %c0_3] : memref<64x128xf32, #tpu.memory_space<vmem>>, vector<64x128xf32>
    %cst = arith.constant dense<0.000000e+00> : vector<256x64xf32>
    %3 = tpu.matmul %1, %2, %cst {dimension_numbers = #tpu.dot_dimension_numbers<[1], [1], [0], [0], [0, 0, 1, 0], [], []>} : vector<256x128xf32>, vector<64x128xf32>, vector<256x64xf32> -> vector<256x64xf32>
    %4 = vector.shape_cast %3 : vector<256x64xf32> to vector<4x64x64xf32>
    %cst_4 = arith.constant dense<0xFF800000> : vector<4x64xf32>
    %5 = vector.multi_reduction <maximumf>, %4, %cst_4 [1] : vector<4x64x64xf32> to vector<4x64xf32>
    %6 = vector.shape_cast %5 : vector<4x64xf32> to vector<4x1x64xf32>
    %7 = vector.broadcast %6 : vector<4x1x64xf32> to vector<4x64x64xf32>
    %8 = arith.subf %4, %7 : vector<4x64x64xf32>
    %9 = math.exp %8 : vector<4x64x64xf32>
    %cst_5 = arith.constant dense<0.000000e+00> : vector<4x64xf32>
    %10 = vector.multi_reduction <add>, %9, %cst_5 [1] : vector<4x64x64xf32> to vector<4x64xf32>
    %11 = vector.shape_cast %10 : vector<4x64xf32> to vector<4x1x64xf32>
    %12 = tpu.reciprocal %11 : vector<4x1x64xf32> -> vector<4x1x64xf32>
    %13 = vector.broadcast %12 : vector<4x1x64xf32> to vector<4x64x64xf32>
    %14 = arith.mulf %9, %13 : vector<4x64x64xf32>
    %cst_6 = arith.constant dense<0.000000e+00> : vector<4x64xf32>
    %15 = vector.multi_reduction <add>, %14, %cst_6 [2] : vector<4x64x64xf32> to vector<4x64xf32>
    %16 = vector.shape_cast %15 : vector<4x64xf32> to vector<4x64x1xf32>
    %17 = tpu.reciprocal %16 : vector<4x64x1xf32> -> vector<4x64x1xf32>
    %18 = vector.broadcast %17 : vector<4x64x1xf32> to vector<4x64x64xf32>
    %19 = arith.mulf %14, %18 : vector<4x64x64xf32>
    %20 = vector.shape_cast %19 : vector<4x64x64xf32> to vector<256x64xf32>
    %c0_7 = arith.constant 0 : index
    %c0_8 = arith.constant 0 : index
    %21 = vector.load %arg3[%c0_7, %c0_8] : memref<128x64xf32, #tpu.memory_space<vmem>>, vector<128x64xf32>
    %cst_9 = arith.constant dense<0.000000e+00> : vector<256x128xf32>
    %22 = tpu.matmul %20, %21, %cst_9 {dimension_numbers = #tpu.dot_dimension_numbers<[1], [1], [0], [0], [0, 0, 1, 0], [], []>} : vector<256x64xf32>, vector<128x64xf32>, vector<256x128xf32> -> vector<256x128xf32>
    %23 = vector.shape_cast %22 : vector<256x128xf32> to vector<4x64x128xf32>
    %c0_10 = arith.constant 0 : index
    %c0_11 = arith.constant 0 : index
    %c0_12 = arith.constant 0 : index
    %24 = vector.load %arg4[%c0_10, %c0_11, %c0_12] : memref<4x64x128xf32, #tpu.memory_space<vmem>>, vector<4x64x128xf32>
    tpu.vector_store %arg4[%c0_10, %c0_11, %c0_12], %23 {strides = array<i32>} : memref<4x64x128xf32, #tpu.memory_space<vmem>>, vector<4x64x128xf32>,
    %c0_13 = arith.constant 0 : index
    %c0_14 = arith.constant 0 : index
    %c0_15 = arith.constant 0 : index
    %25 = vector.load %arg5[%c0_13, %c0_14, %c0_15] : memref<4x64x64xf32, #tpu.memory_space<vmem>>, vector<4x64x64xf32>
    tpu.vector_store %arg5[%c0_13, %c0_14, %c0_15], %19 {strides = array<i32>} : memref<4x64x64xf32, #tpu.memory_space<vmem>>, vector<4x64x64xf32>,
    return
  }
  func.func @transform_0(%arg0: i32) -> (i32, i32, i32) {
    %c0_i32 = arith.constant 0 : i32
    %c0_i32_0 = arith.constant 0 : i32
    %c0_i32_1 = arith.constant 0 : i32
    return %arg0, %c0_i32, %c0_i32_0 : i32, i32, i32
  }
  func.func @transform_1(%arg0: i32) -> (i32, i32) {
    %c0_i32 = arith.constant 0 : i32
    %c0_i32_0 = arith.constant 0 : i32
    %c0_i32_1 = arith.constant 0 : i32
    return %c0_i32, %c0_i32_0 : i32, i32
  }
  func.func @transform_2(%arg0: i32) -> (i32, i32) {
    %c0_i32 = arith.constant 0 : i32
    %c0_i32_0 = arith.constant 0 : i32
    %c0_i32_1 = arith.constant 0 : i32
    return %c0_i32, %c0_i32_0 : i32, i32
  }
  func.func @transform_3(%arg0: i32) -> (i32, i32, i32) {
    %c0_i32 = arith.constant 0 : i32
    %c0_i32_0 = arith.constant 0 : i32
    %c0_i32_1 = arith.constant 0 : i32
    return %arg0, %c0_i32, %c0_i32_0 : i32, i32, i32
  }
  func.func @transform_4(%arg0: i32) -> (i32, i32, i32) {
    %c0_i32 = arith.constant 0 : i32
    %c0_i32_0 = arith.constant 0 : i32
    %c0_i32_1 = arith.constant 0 : i32
    return %arg0, %c0_i32, %c0_i32_0 : i32, i32, i32
  }
}

</mosaic_0001>

<bundles_post_ra>
// kernel: external_attention.1
= control target key start
LH: loop header
LB: loop body
LE: loop exit
PB: predicated region body
PF: predicated region fallthrough
CT: control target
= control target key end

     0   :  { %10 = vsyncpa [#allocation3], 0  ;;  %s3182_s0 = inlined_call_operand.hbm [shape: f32[4,64,128], index: 0, kind: input, shape index: {}]   ;;  %s3183_s1 = inlined_call_operand.vmem [shape: f32[64,128], index: 1, kind: input, shape index: {}]   ;;  %s3184_s2 = inlined_call_operand.vmem [shape: f32[128,64], index: 2, kind: input, shape index: {}]   ;;  %s3185_s3 = inlined_call_operand.hbm [shape: f32[4,64,128], index: 3, kind: output, shape index: {0}]   ;;  %s3186_s4 = inlined_call_operand.hbm [shape: f32[4,64,64], index: 4, kind: output, shape index: {1}]  }
   0x1   :  { %11 = vsyncpa [#allocation4], 0 }
   0x2   :  { %12 = vsyncpa [#allocation7], 0  ;;  %s17_s17 = sshll.u32 %s3182_s0, 4  ;;  %s1797_s18 = smov [#allocation2]   ;;  %s18_s17 = int_to_ptr.hbm [resolvable:$true] %s17_s17 }
   0x3   :  { %s19_s19 = sshll.u32 %s1797_s18, 4  ;;  %s1798_s20 = smov 128   ;;  %s20_s19 = int_to_ptr.vmem [resolvable:$true] %s19_s19 }
   0x4   :  { %s1799_s21 = smov 8  }
   0x5   :  { %25 = dma.hbm_to_vmem [thread:$0]  %s18_s17, 4096, %s20_s19, [#allocation3], %s1798_s20, %s1798_s20, %s1799_s21  }
   0x6   :  { %1791 = dma.done.wait [#allocation3], 4096  }
   0x7   :  { %1792 = vsyncadd [#allocation3], 4294963200  ;;  %v73_v0 = vld [vmem:[%s3183_s1 + $0x38] sm:$0xff]  ;;  %v72_v1 = vld [vmem:[%s3183_s1 + $0x30] sm:$0xff]  ;;  %vm187_vm0 = vcmask 523264   ;;  %s1472_s19 = sshll.u32 %s3186_s4, 4  ;;  %s1473_s19 = int_to_ptr.hbm [resolvable:$true] %s1472_s19 }
   0x8   :  { %82 = vmatpush.xpose.msra.mxu0 %v73_v0  ;;  %1538 = vmatpush.xpose.msra.mxu3 %v73_v0  ;;  %v71_v2 = vld [vmem:[%s3183_s1 + $0x28] sm:$0xff]  ;;  %v70_v3 = vld [vmem:[%s3183_s1 + $0x20] sm:$0xff]  ;;  %v69_v4 = vld [vmem:[%s3183_s1 + $0x18] sm:$0xff]  ;;  %s1801_s4 = smov [#allocation5]   ;;  %s1459_s0 = sshll.u32 %s3185_s3, 4  ;;  %s1460_s0 = int_to_ptr.hbm [resolvable:$true] %s1459_s0 }
   0x9   :  { %v68_v5 = vld [vmem:[%s3183_s1 + $0x10] sm:$0xff]  ;;  %v67_v6 = vld [vmem:[%s3183_s1 + $0x8] sm:$0xff]  ;;  %v66_v7 = vld [vmem:[%s3183_s1] sm:$0xff]  ;;  %s1457_s22 = sshll.u32 %s1801_s4, 4  ;;  %s1458_s22 = int_to_ptr.vmem [resolvable:$true] %s1457_s22 }
   0xa   :  { %v34_v8 = vld [vmem:[#allocation2] sm:$0xff]  ;;  %v52_v9 = vld [vmem:[#allocation2 + $0x90] sm:$0xff]  ;;  %v35_v10 = vld [vmem:[#allocation2 + $0x8] sm:$0xff] }
   0xb   :  { %v53_v11 = vld [vmem:[#allocation2 + $0x98] sm:$0xff]  ;;  %v36_v12 = vld [vmem:[#allocation2 + $0x10] sm:$0xff]  ;;  %v54_v13 = vld [vmem:[#allocation2 + $0xa0] sm:$0xff] }
   0xc   :  { %83 = vmatpush.xpose.msra.mxu0 %v72_v1  ;;  %1539 = vmatpush.xpose.msra.mxu3 %v72_v1  ;;  %v37_v14 = vld [vmem:[#allocation2 + $0x18] sm:$0xff]  ;;  %v55_v15 = vld [vmem:[#allocation2 + $0xa8] sm:$0xff]  ;;  %v38_v16 = vld [vmem:[#allocation2 + $0x20] sm:$0xff] }
   0xd   :  { %v56_v17 = vld [vmem:[#allocation2 + $0xb0] sm:$0xff]  ;;  %v39_v18 = vld [vmem:[#allocation2 + $0x28] sm:$0xff]  ;;  %v57_v19 = vld [vmem:[#allocation2 + $0xb8] sm:$0xff] }
   0xe   :  { %v40_v20 = vld [vmem:[#allocation2 + $0x30] sm:$0xff]  ;;  %v58_v21 = vld [vmem:[#allocation2 + $0xc0] sm:$0xff]  ;;  %v41_v22 = vld [vmem:[#allocation2 + $0x38] sm:$0xff] }
   0xf   :  { %v59_v23 = vld [vmem:[#allocation2 + $0xc8] sm:$0xff]  ;;  %v42_v24 = vld [vmem:[#allocation2 + $0x40] sm:$0xff]  ;;  %v60_v25 = vld [vmem:[#allocation2 + $0xd0] sm:$0xff] }
  0x10   :  { %84 = vmatpush.xpose.msra.mxu0 %v71_v2  ;;  %1540 = vmatpush.xpose.msra.mxu3 %v71_v2  ;;  %v43_v26 = vld [vmem:[#allocation2 + $0x48] sm:$0xff]  ;;  %v61_v27 = vld [vmem:[#allocation2 + $0xd8] sm:$0xff]  ;;  %v44_v28 = vld [vmem:[#allocation2 + $0x50] sm:$0xff] }
  0x11   :  { %v62_v29 = vld [vmem:[#allocation2 + $0xe0] sm:$0xff]  ;;  %v45_v30 = vld [vmem:[#allocation2 + $0x58] sm:$0xff]  ;;  %v63_v31 = vld [vmem:[#allocation2 + $0xe8] sm:$0xff] }
  0x12   :  { %v46_v32 = vld [vmem:[#allocation2 + $0x60] sm:$0xff]  ;;  %v64_v33 = vld [vmem:[#allocation2 + $0xf0] sm:$0xff]  ;;  %v47_v34 = vld [vmem:[#allocation2 + $0x68] sm:$0xff] }
  0x13   :  { %v65_v35 = vld [vmem:[#allocation2 + $0xf8] sm:$0xff]  ;;  %v48_v36 = vld [vmem:[#allocation2 + $0x70] sm:$0xff]  ;;  %v50_v39 = vld [vmem:[#allocation2 + $0x80] sm:$0xff] }
  0x14   :  { %85 = vmatpush.xpose.msra.mxu0 %v70_v3  ;;  %1541 = vmatpush.xpose.msra.mxu3 %v70_v3  ;;  %v49_v37 = vld [vmem:[#allocation2 + $0x78] sm:$0xff]  ;;  %v51_v42 = vld [vmem:[#allocation2 + $0x88] sm:$0xff] }
  0x18   :  { %86 = vmatpush.xpose.msra.mxu0 %v69_v4  ;;  %1542 = vmatpush.xpose.msra.mxu3 %v69_v4 }
  0x1c   :  { %87 = vmatpush.xpose.msra.mxu0 %v68_v5  ;;  %1543 = vmatpush.xpose.msra.mxu3 %v68_v5 }
  0x20   :  { %88 = vmatpush.xpose.msra.mxu0 %v67_v6  ;;  %1544 = vmatpush.xpose.msra.mxu3 %v67_v6 }
  0x24   :  { %89 = vmatpush.xpose.msra.mxu0 %v66_v7  ;;  %1545 = vmatpush.xpose.msra.mxu3 %v66_v7 }
  0x27   :  { %90 = vmatmul.f32.vlgmr.msra.gmra.mxu0 %v34_v8  ;;  %144 = vmatmul.f32.vlgmr.msra.gmra.mxu3 %v52_v9 }
  0x2f   :  { %93 = vmatmul.f32.gmra.mxu0 %v35_v10  ;;  %147 = vmatmul.f32.gmra.mxu3 %v53_v11 }
  0x37   :  { %96 = vmatmul.f32.gmra.mxu0 %v36_v12  ;;  %150 = vmatmul.f32.gmra.mxu3 %v54_v13 }
  0x3f   :  { %99 = vmatmul.f32.gmra.mxu0 %v37_v14  ;;  %153 = vmatmul.f32.gmra.mxu3 %v55_v15 }
  0x47   :  { %102 = vmatmul.f32.gmra.mxu0 %v38_v16  ;;  %156 = vmatmul.f32.gmra.mxu3 %v56_v17 }
  0x4f   :  { %105 = vmatmul.f32.gmra.mxu0 %v39_v18  ;;  %159 = vmatmul.f32.gmra.mxu3 %v57_v19 }
  0x57   :  { %108 = vmatmul.f32.gmra.mxu0 %v40_v20  ;;  %162 = vmatmul.f32.gmra.mxu3 %v58_v21 }
  0x5f   :  { %111 = vmatmul.f32.gmra.mxu0 %v41_v22  ;;  %165 = vmatmul.f32.gmra.mxu3 %v59_v23 }
  0x67   :  { %114 = vmatmul.f32.gmra.mxu0 %v42_v24  ;;  %168 = vmatmul.f32.gmra.mxu3 %v60_v25 }
  0x6f   :  { %117 = vmatmul.f32.gmra.mxu0 %v43_v26  ;;  %171 = vmatmul.f32.gmra.mxu3 %v61_v27 }
  0x77   :  { %120 = vmatmul.f32.gmra.mxu0 %v44_v28  ;;  %174 = vmatmul.f32.gmra.mxu3 %v62_v29 }
  0x7f   :  { %123 = vmatmul.f32.gmra.mxu0 %v45_v30  ;;  %177 = vmatmul.f32.gmra.mxu3 %v63_v31 }
  0x87   :  { %126 = vmatmul.f32.gmra.mxu0 %v46_v32  ;;  %180 = vmatmul.f32.gmra.mxu3 %v64_v33 }
  0x8f   :  { %129 = vmatmul.f32.gmra.mxu0 %v47_v34  ;;  %183 = vmatmul.f32.gmra.mxu3 %v65_v35 }
  0x97   :  { %132 = vmatmul.f32.gmra.mxu0 %v48_v36 }
  0x9f   :  { %135 = vmatmul.f32.gmra.mxu0 %v49_v37 }
  0xa4   :  { %v91_v38 = vpop.f32.mrf.mxu0 }
  0xa5   :  { %v188_v45 = vsel %vm187_vm0, %v91_v38, -inf }
  0xa7   :  { %138 = vmatmul.f32.gmra.mxu0 %v50_v39 }
  0xaa   :  { %v1857_v40 = vpop.f32.mrf.mxu3 }
  0xac   :  { %v94_v41 = vpop.f32.mrf.mxu0 }
  0xad   :  { %v189_v43 = vsel %vm187_vm0, %v94_v41, -inf }
  0xae   :  { %v190_v46 = vmax.f32 %v188_v45, %v189_v43 }
  0xaf   :  { %141 = vmatmul.f32.gmra.mxu0 %v51_v42 }
  0xb2   :  { %v1860_v44 = vpop.f32.mrf.mxu3 }
  0xb4   :  { %v97_v47 = vpop.f32.mrf.mxu0 }
  0xb5   :  { %v191_v48 = vsel %vm187_vm0, %v97_v47, -inf }
  0xb6   :  { %v192_v49 = vmax.f32 %v190_v46, %v191_v48 }
  0xba   :  { %v1864_v50 = vpop.f32.mrf.mxu3 }
  0xbc   :  { %v100_v51 = vpop.f32.mrf.mxu0 }
  0xbd   :  { %v193_v52 = vsel %vm187_vm0, %v100_v51, -inf }
  0xbe   :  { %v194_v53 = vmax.f32 %v192_v49, %v193_v52 }
  0xc2   :  { %v1867_v54 = vpop.f32.mrf.mxu3 }
  0xc4   :  { %v103_v55 = vpop.f32.mrf.mxu0 }
  0xc5   :  { %v195_v56 = vsel %vm187_vm0, %v103_v55, -inf }
  0xc6   :  { %v196_v57 = vmax.f32 %v194_v53, %v195_v56 }
  0xca   :  { %v1870_v58 = vpop.f32.mrf.mxu3 }
  0xcc   :  { %v106_v59 = vpop.f32.mrf.mxu0 }
  0xcd   :  { %v197_v60 = vsel %vm187_vm0, %v106_v59, -inf }
  0xce   :  { %v198_v61 = vmax.f32 %v196_v57, %v197_v60 }
  0xd2   :  { %v1873_v62 = vpop.f32.mrf.mxu3 }
  0xd4   :  { %v109_v63 = vpop.f32.mrf.mxu0 }
  0xd5   :  { %v199_v0 = vsel %vm187_vm0, %v109_v63, -inf }
  0xd6   :  { %v200_v1 = vmax.f32 %v198_v61, %v199_v0 }
  0xda   :  { %v1876_v2 = vpop.f32.mrf.mxu3 }
  0xdc   :  { %v112_v3 = vpop.f32.mrf.mxu0 }
  0xdd   :  { %v201_v4 = vsel %vm187_vm0, %v112_v3, -inf }
  0xde   :  { %v202_v5 = vmax.f32 %v200_v1, %v201_v4 }
  0xe0   :  { %v203_v6 = vrot.slane %v202_v5, 4 }
  0xe2   :  { %v204_v7 = vmax.f32 %v202_v5, %v203_v6  ;;  %v1879_v8 = vpop.f32.mrf.mxu3 }
  0xe3   :  { %v252_v39 = vsel %vm187_vm0, %v1879_v8, -inf }
  0xe4   :  { %v205_v9 = vrot.slane %v204_v7, 2  ;;  %v1881_v10 = vpop.f32.mrf.mxu0 }
  0xe6   :  { %v206_v11 = vmax.f32 %v204_v7, %v205_v9 }
  0xe8   :  { %v207_v12 = vrot.slane %v206_v11, 1 }
  0xea   :  { %v208_v13 = vmax.f32 %v206_v11, %v207_v12  ;;  %v1883_v14 = vpop.f32.mrf.mxu3 }
  0xeb   :  { %v254_v52 = vsel %vm187_vm0, %v1883_v14, -inf }
  0xec   :  { %v279_v15 = vsub.f32 %v112_v3, %v208_v13  ;;  %v1885_v16 = vpop.f32.mrf.mxu0  ;;  %v272_v17 = vsub.f32 %v91_v38, %v208_v13  ;;  %v273_v18 = vsub.f32 %v94_v41, %v208_v13  ;;  %v274_v19 = vsub.f32 %v97_v47, %v208_v13 }
  0xed   :  { %v275_v20 = vsub.f32 %v100_v51, %v208_v13  ;;  %v276_v21 = vsub.f32 %v103_v55, %v208_v13  ;;  %v277_v22 = vsub.f32 %v106_v59, %v208_v13  ;;  %v278_v23 = vsub.f32 %v109_v63, %v208_v13 }
  0xee   :  { %v304_v24 = vmul.f32 1.442695, %v272_v17  ;;  %v306_v25 = vmul.f32 1.442695, %v273_v18  ;;  %v308_v26 = vmul.f32 1.442695, %v274_v19 }
  0xef   :  { %v310_v27 = vmul.f32 1.442695, %v275_v20  ;;  %v312_v29 = vmul.f32 1.442695, %v276_v21  ;;  %v314_v31 = vmul.f32 1.442695, %v277_v22 }
  0xf0   :  { %1583 = vpow2.f32 %v304_v24  ;;  %v316_v32 = vmul.f32 1.442695, %v278_v23  ;;  %v318_v35 = vmul.f32 1.442695, %v279_v15  ;;  %v251_v38 = vsel %vm187_vm0, %v1876_v2, -inf }
  0xf1   :  { %1585 = vpow2.f32 %v306_v25  ;;  %v253_v48 = vmax.f32 %v251_v38, %v252_v39 }
  0xf2   :  { %v1887_v28 = vpop.f32.mrf.mxu3  ;;  %1587 = vpow2.f32 %v308_v26  ;;  %v210_v26 = vsel %vm187_vm0, %v1885_v16, -inf }
  0xf3   :  { %1589 = vpow2.f32 %v310_v27  ;;  %v255_v60 = vmax.f32 %v253_v48, %v254_v52  ;;  %v256_v63 = vsel %vm187_vm0, %v1887_v28, -inf }
  0xf4   :  { %v1889_v30 = vpop.f32.mrf.mxu0  ;;  %1591 = vpow2.f32 %v312_v29 }
  0xf5   :  { %1593 = vpow2.f32 %v314_v31  ;;  %v257_v6 = vmax.f32 %v255_v60, %v256_v63  ;;  %v209_v31 = vsel %vm187_vm0, %v1881_v10, -inf }
  0xf6   :  { %v1891_v33 = vpop.eup %1583  ;;  %1595 = vpow2.f32 %v316_v32  ;;  %v212_v32 = vsel %vm187_vm0, %v1889_v30, -inf }
  0xf7   :  { %v1893_v34 = vpop.eup %1585  ;;  %v368_v36 = vsel %vm187_vm0, %v1891_v33, 0.0  ;;  %1597 = vpow2.f32 %v318_v35  ;;  %v211_v35 = vmax.f32 %v209_v31, %v210_v26 }
  0xf8   :  { %v1897_v37 = vpop.eup %1587  ;;  %v369_v41 = vsel %vm187_vm0, %v1893_v34, 0.0 }
  0xf9   :  { %v1905_v42 = vpop.eup %1589  ;;  %v370_v45 = vadd.f32 %v369_v41, %v368_v36  ;;  %v371_v46 = vsel %vm187_vm0, %v1897_v37, 0.0 }
  0xfa   :  { %v1907_v43 = vpop.f32.mrf.mxu3  ;;  %v1911_v47 = vpop.eup %1591  ;;  %v373_v53 = vsel %vm187_vm0, %v1905_v42, 0.0 }
  0xfb   :  { %v372_v51 = vadd.f32 %v371_v46, %v370_v45  ;;  %v1919_v55 = vpop.eup %1593  ;;  %v375_v57 = vsel %vm187_vm0, %v1911_v47, 0.0  ;;  %v258_v12 = vsel %vm187_vm0, %v1907_v43, -inf  ;;  %v213_v45 = vmax.f32 %v211_v35, %v212_v32 }
  0xfc   :  { %v1913_v49 = vpop.f32.mrf.mxu0  ;;  %v1923_v59 = vpop.eup %1595  ;;  %v377_v0 = vsel %vm187_vm0, %v1919_v55, 0.0  ;;  %v259_v15 = vmax.f32 %v257_v6, %v258_v12 }
  0xfd   :  { %v374_v56 = vadd.f32 %v373_v53, %v372_v51  ;;  %v1929_v1 = vpop.eup %1597  ;;  %v379_v5 = vsel %vm187_vm0, %v1923_v59, 0.0  ;;  %v214_v39 = vsel %vm187_vm0, %v1913_v49, -inf }
  0xfe   :  { %v381_v11 = vsel %vm187_vm0, %v1929_v1, 0.0  ;;  %v215_v52 = vmax.f32 %v213_v45, %v214_v39 }
  0xff   :  { %v376_v61 = vadd.f32 %v375_v57, %v374_v56 }
 0x101   :  { %v378_v4 = vadd.f32 %v377_v0, %v376_v61 }
 0x102   :  { %v1931_v3 = vpop.f32.mrf.mxu3 }
 0x103   :  { %v380_v9 = vadd.f32 %v379_v5, %v378_v4  ;;  %v260_v18 = vsel %vm187_vm0, %v1931_v3, -inf }
 0x104   :  { %v1935_v7 = vpop.f32.mrf.mxu0  ;;  %v261_v21 = vmax.f32 %v259_v15, %v260_v18 }
 0x105   :  { %v382_v13 = vadd.f32 %v381_v11, %v380_v9  ;;  %v216_v51 = vsel %vm187_vm0, %v1935_v7, -inf }
 0x106   :  { %v217_v57 = vmax.f32 %v215_v52, %v216_v51 }
 0x107   :  { %v383_v17 = vrot.slane %v382_v13, 4 }
 0x109   :  { %v384_v20 = vadd.f32 %v383_v17, %v382_v13 }
 0x10a   :  { %v1943_v19 = vpop.f32.mrf.mxu3 }
 0x10b   :  { %v385_v23 = vrot.slane %v384_v20, 2  ;;  %v262_v24 = vsel %vm187_vm0, %v1943_v19, -inf }
 0x10c   :  { %v1945_v22 = vpop.f32.mrf.mxu0  ;;  %v263_v27 = vmax.f32 %v261_v21, %v262_v24 }
 0x10d   :  { %v386_v25 = vadd.f32 %v385_v23, %v384_v20  ;;  %v218_v56 = vsel %vm187_vm0, %v1945_v22, -inf }
 0x10e   :  { %v219_v0 = vmax.f32 %v217_v57, %v218_v56 }
 0x10f   :  { %v387_v29 = vrot.slane %v386_v25, 1 }
 0x111   :  { %v388_v38 = vadd.f32 %v387_v29, %v386_v25 }
 0x112   :  { %v1955_v36 = vpop.f32.mrf.mxu3 }
 0x113   :  { %v264_v41 = vsel %vm187_vm0, %v1955_v36, -inf  ;;  %1599 = vrcp.f32 %v388_v38  ;;  %v463_v18 = vand.u32 2147483648, %v388_v38  ;;  %v461_v21 = vand.u32 2147483647, %v388_v38 }
 0x114   :  { %v265_v46 = vmax.f32 %v263_v27, %v264_v41  ;;  %v1961_v48 = vpop.f32.mrf.mxu0  ;;  %vm457_vm2 = vweird.f32 %v388_v38 }
 0x115   :  { %v220_v61 = vsel %vm187_vm0, %v1961_v48, -inf  ;;  %v464_v27 = vor.u32 1.1754944e-38, %v463_v18  ;;  %vm462_vm4 = vcmp.eq.f32.partialorder %v461_v21, 8.507059e+37  ;;  %v237_v21 = vsel %vm187_vm0, %v1864_v50, -inf }
 0x116   :  { %v266_v53 = vrot.slane %v265_v46, 4  ;;  %v221_v9 = vmax.f32 %v219_v0, %v220_v61 }
 0x118   :  { %v267_v60 = vmax.f32 %v265_v46, %v266_v53 }
 0x119   :  { %v1600_v63 = vpop.eup %1599 }
 0x11a   :  { %v268_v4 = vrot.slane %v267_v60, 2  ;;  %v453_v5 = vmul.f32 %v1600_v63, %v388_v38  ;;  %vm458_vm1 = vweird.f32 %v1600_v63 }
 0x11b   :  { %vm459_vm3 = vmor %vm457_vm2, %vm458_vm1 }
 0x11c   :  { %v269_v6 = vmax.f32 %v267_v60, %v268_v4  ;;  %v1969_v11 = vpop.f32.mrf.mxu0  ;;  %v454_v13 = vsub.f32 1.0, %v453_v5 }
 0x11d   :  { %v222_v12 = vsel %vm187_vm0, %v1969_v11, -inf }
 0x11e   :  { %v270_v15 = vrot.slane %v269_v6, 1  ;;  %v223_v17 = vmax.f32 %v221_v9, %v222_v12  ;;  %v455_v20 = vmul.f32 %v1600_v63, %v454_v13 }
 0x120   :  { %v224_v23 = vrot.slane %v223_v17, 4  ;;  %v1973_v24 = vmax.f32 %v269_v6, %v270_v15  ;;  %v456_v25 = vadd.f32 %v1600_v63, %v455_v20 }
 0x122   :  { %v225_v26 = vmax.f32 %v223_v17, %v224_v23  ;;  %v460_v29 = vsel %vm459_vm3, %v1600_v63, %v456_v25  ;;  %v296_v38 = vsub.f32 %v1876_v2, %v1973_v24  ;;  %v299_v12 = vsub.f32 %v1887_v28, %v1973_v24 }
 0x123   :  { %v465_v35 = vsel %vm462_vm4, %v464_v27, %v460_v29  ;;  %v300_v13 = vsub.f32 %v1907_v43, %v1973_v24  ;;  %v301_v20 = vsub.f32 %v1931_v3, %v1973_v24  ;;  %v302_v28 = vsub.f32 %v1943_v19, %v1973_v24 }
 0x124   :  { %v226_v31 = vrot.slane %v225_v26, 2  ;;  %v1975_v32 = vpop.f32.mrf.mxu0  ;;  %v1978_v39 = vmul.f32 %v1893_v34, %v465_v35  ;;  %v1981_v41 = vmul.f32 %v1891_v33, %v465_v35  ;;  %v1984_v45 = vmul.f32 %v1905_v42, %v465_v35 }
 0x125   :  { %v1989_v51 = vmul.f32 %v1923_v59, %v465_v35  ;;  %v1992_v52 = vmul.f32 %v1911_v47, %v465_v35  ;;  %v1995_v53 = vmul.f32 %v1897_v37, %v465_v35  ;;  %v297_v33 = vsub.f32 %v1879_v8, %v1973_v24 }
 0x126   :  { %v227_v46 = vmax.f32 %v225_v26, %v226_v31  ;;  %v2000_v42 = vmul.f32 %v1929_v1, %v465_v35  ;;  %v2003_v56 = vmul.f32 %v1919_v55, %v465_v35  ;;  %v352_v2 = vmul.f32 1.442695, %v296_v38 }
 0x127   :  { %v354_v59 = vmul.f32 1.442695, %v297_v33  ;;  %v233_v8 = vsel %vm187_vm0, %v1857_v40, -inf  ;;  %v239_v43 = vsel %vm187_vm0, %v1867_v54, -inf  ;;  %v358_v27 = vmul.f32 1.442695, %v299_v12 }
 0x128   :  { %v228_v34 = vrot.slane %v227_v46, 1  ;;  %1601 = vpow2.f32 %v352_v2  ;;  %v241_v3 = vsel %vm187_vm0, %v1870_v58, -inf  ;;  %v303_v31 = vsub.f32 %v1955_v36, %v1973_v24 }
 0x129   :  { %1603 = vpow2.f32 %v354_v59  ;;  %v360_v35 = vmul.f32 1.442695, %v300_v13  ;;  %v362_v33 = vmul.f32 1.442695, %v301_v20 }
 0x12a   :  { %v229_v57 = vmax.f32 %v227_v46, %v228_v34 }
 0x12c   :  { %v280_v60 = vsub.f32 %v1881_v10, %v229_v57  ;;  %v281_v47 = vsub.f32 %v1885_v16, %v229_v57  ;;  %v282_v37 = vsub.f32 %v1889_v30, %v229_v57  ;;  %v283_v61 = vsub.f32 %v1913_v49, %v229_v57  ;;  %v2013_v55 = vpop.f32.mrf.mxu0 }
 0x12d   :  { %v284_v1 = vsub.f32 %v1935_v7, %v229_v57  ;;  %v285_v63 = vsub.f32 %v1945_v22, %v229_v57  ;;  %v286_v0 = vsub.f32 %v1961_v48, %v229_v57  ;;  %v287_v16 = vsub.f32 %v1969_v11, %v229_v57 }
 0x12e   :  { %v320_v4 = vmul.f32 1.442695, %v280_v60  ;;  %v322_v10 = vmul.f32 1.442695, %v281_v47  ;;  %v324_v5 = vmul.f32 1.442695, %v282_v37  ;;  %v298_v49 = vsub.f32 %v1883_v14, %v1973_v24  ;;  %v2029_v15 = vpop.eup %1601 }
 0x12f   :  { %v326_v30 = vmul.f32 1.442695, %v283_v61  ;;  %v328_v6 = vmul.f32 1.442695, %v284_v1  ;;  %v230_v7 = vsel %vm187_vm0, %v1975_v32, -inf  ;;  %v231_v22 = vsel %vm187_vm0, %v2013_v55, -inf  ;;  %v2037_v25 = vpop.eup %1603 }
 0x130   :  { %1605 = vpow2.f32 %v320_v4  ;;  %v330_v48 = vmul.f32 1.442695, %v285_v63  ;;  %v232_v9 = vmax.f32 %v230_v7, %v231_v22  ;;  %v235_v11 = vsel %vm187_vm0, %v1860_v44, -inf }
 0x131   :  { %1607 = vpow2.f32 %v322_v10  ;;  %v332_v14 = vmul.f32 1.442695, %v286_v0  ;;  %v334_v17 = vmul.f32 1.442695, %v287_v16  ;;  %v356_v23 = vmul.f32 1.442695, %v298_v49 }
 0x132   :  { %1609 = vpow2.f32 %v324_v5  ;;  %v234_v18 = vmax.f32 %v232_v9, %v233_v8  ;;  %v364_v57 = vmul.f32 1.442695, %v302_v28  ;;  %v431_v36 = vsel %vm187_vm0, %v2029_v15, 0.0 }
 0x133   :  { %1611 = vpow2.f32 %v326_v30  ;;  %v432_v47 = vsel %vm187_vm0, %v2037_v25, 0.0  ;;  %v243_v61 = vsel %vm187_vm0, %v1873_v62, -inf  ;;  %v366_v8 = vmul.f32 1.442695, %v303_v31 }
 0x134   :  { %1613 = vpow2.f32 %v328_v6  ;;  %v236_v26 = vmax.f32 %v234_v18, %v235_v11  ;;  %v433_v16 = vadd.f32 %v432_v47, %v431_v36 }
 0x135   :  { %1615 = vpow2.f32 %v330_v48 }
 0x136   :  { %v2041_v29 = vpop.eup %1605  ;;  %1617 = vpow2.f32 %v332_v14  ;;  %v238_v46 = vmax.f32 %v236_v26, %v237_v21 }
 0x137   :  { %v2047_v19 = vpop.eup %1607  ;;  %1619 = vpow2.f32 %v334_v17  ;;  %v389_v38 = vsel %vm187_vm0, %v2041_v29, 0.0 }
 0x138   :  { %v2051_v34 = vpop.eup %1609  ;;  %v390_v2 = vsel %vm187_vm0, %v2047_v19, 0.0  ;;  %1621 = vpow2.f32 %v356_v23  ;;  %v240_v60 = vmax.f32 %v238_v46, %v239_v43 }
 0x139   :  { %v2057_v24 = vpop.eup %1611  ;;  %v391_v59 = vadd.f32 %v390_v2, %v389_v38  ;;  %1623 = vpow2.f32 %v358_v27  ;;  %v392_v1 = vsel %vm187_vm0, %v2051_v34, 0.0 }
 0x13a   :  { %v2061_v37 = vpop.eup %1613  ;;  %1625 = vpow2.f32 %v360_v35  ;;  %v242_v4 = vmax.f32 %v240_v60, %v241_v3  ;;  %v394_v5 = vsel %vm187_vm0, %v2057_v24, 0.0 }
 0x13b   :  { %v2067_v63 = vpop.eup %1615  ;;  %v393_v0 = vadd.f32 %v392_v1, %v391_v59  ;;  %1627 = vpow2.f32 %v362_v33  ;;  %v396_v22 = vsel %vm187_vm0, %v2061_v37, 0.0 }
 0x13c   :  { %v2069_v10 = vpop.eup %1617  ;;  %1629 = vpow2.f32 %v364_v57  ;;  %v244_v6 = vmax.f32 %v242_v4, %v243_v61  ;;  %v398_v13 = vsel %vm187_vm0, %v2067_v63, 0.0 }
 0x13d   :  { %v2073_v30 = vpop.eup %1619  ;;  %v395_v49 = vadd.f32 %v394_v5, %v393_v0  ;;  %1631 = vpow2.f32 %v366_v8  ;;  %v400_v26 = vsel %vm187_vm0, %v2069_v10, 0.0 }
 0x13e   :  { %v2075_v7 = vpop.eup %1621  ;;  %v245_v12 = vrot.slane %v244_v6, 4  ;;  %v402_v46 = vsel %vm187_vm0, %v2073_v30, 0.0 }
 0x13f   :  { %v2079_v48 = vpop.eup %1623  ;;  %v397_v9 = vadd.f32 %v396_v22, %v395_v49  ;;  %v434_v11 = vsel %vm187_vm0, %v2075_v7, 0.0 }
 0x140   :  { %v2083_v14 = vpop.eup %1625  ;;  %v435_v17 = vadd.f32 %v434_v11, %v433_v16  ;;  %v436_v18 = vsel %vm187_vm0, %v2079_v48, 0.0  ;;  %v246_v28 = vmax.f32 %v244_v6, %v245_v12 }
 0x141   :  { %v2089_v20 = vpop.eup %1627  ;;  %v399_v21 = vadd.f32 %v398_v13, %v397_v9  ;;  %v438_v23 = vsel %vm187_vm0, %v2083_v14, 0.0 }
 0x142   :  { %v2093_v43 = vpop.eup %1629  ;;  %v437_v27 = vadd.f32 %v436_v18, %v435_v17  ;;  %v247_v31 = vrot.slane %v246_v28, 2  ;;  %v440_v35 = vsel %vm187_vm0, %v2089_v20, 0.0 }
 0x143   :  { %v401_v3 = vadd.f32 %v400_v26, %v399_v21  ;;  %v2099_v38 = vpop.eup %1631  ;;  %v442_v36 = vsel %vm187_vm0, %v2093_v43, 0.0 }
 0x144   :  { %v439_v33 = vadd.f32 %v438_v23, %v437_v27  ;;  %v248_v57 = vmax.f32 %v246_v28, %v247_v31  ;;  %v444_v60 = vsel %vm187_vm0, %v2099_v38, 0.0 }
 0x145   :  { %v403_v2 = vadd.f32 %v402_v46, %v401_v3 }
 0x146   :  { %v441_v59 = vadd.f32 %v440_v35, %v439_v33  ;;  %v249_v61 = vrot.slane %v248_v57, 1 }
 0x147   :  { %v404_v47 = vrot.slane %v403_v2, 4 }
 0x148   :  { %v443_v8 = vadd.f32 %v442_v36, %v441_v59  ;;  %v250_v0 = vmax.f32 %v248_v57, %v249_v61 }
 0x149   :  { %v405_v1 = vadd.f32 %v404_v47, %v403_v2 }
 0x14a   :  { %v445_v4 = vadd.f32 %v444_v60, %v443_v8  ;;  %v288_v16 = vsub.f32 %v1975_v32, %v250_v0  ;;  %v289_v49 = vsub.f32 %v2013_v55, %v250_v0  ;;  %v290_v6 = vsub.f32 %v1857_v40, %v250_v0 }
 0x14b   :  { %v406_v5 = vrot.slane %v405_v1, 2  ;;  %v291_v22 = vsub.f32 %v1860_v44, %v250_v0  ;;  %v292_v9 = vsub.f32 %v1864_v50, %v250_v0  ;;  %v293_v18 = vsub.f32 %v1867_v54, %v250_v0 }
 0x14c   :  { %v336_v11 = vmul.f32 1.442695, %v288_v16  ;;  %v338_v13 = vmul.f32 1.442695, %v289_v49  ;;  %v340_v17 = vmul.f32 1.442695, %v290_v6  ;;  %v294_v32 = vsub.f32 %v1870_v58, %v250_v0 }
 0x14d   :  { %v407_v12 = vadd.f32 %v406_v5, %v405_v1  ;;  %v342_v21 = vmul.f32 1.442695, %v291_v22  ;;  %v446_v23 = vrot.slane %v445_v4, 4  ;;  %v344_v55 = vmul.f32 1.442695, %v292_v9 }
 0x14e   :  { %1633 = vpow2.f32 %v336_v11  ;;  %v295_v44 = vsub.f32 %v1873_v62, %v250_v0  ;;  %v346_v50 = vmul.f32 1.442695, %v293_v18  ;;  %v348_v27 = vmul.f32 1.442695, %v294_v32 }
 0x14f   :  { %v408_v28 = vrot.slane %v407_v12, 1  ;;  %1635 = vpow2.f32 %v338_v13  ;;  %v447_v40 = vadd.f32 %v446_v23, %v445_v4 }
 0x150   :  { %1637 = vpow2.f32 %v340_v17  ;;  %v350_v58 = vmul.f32 1.442695, %v295_v44 }
 0x151   :  { %v409_v26 = vadd.f32 %v408_v28, %v407_v12  ;;  %1639 = vpow2.f32 %v342_v21  ;;  %v448_v3 = vrot.slane %v447_v40, 2 }
 0x153   :  { %1641 = vrcp.f32 %v409_v26  ;;  %v449_v46 = vadd.f32 %v448_v3, %v447_v40  ;;  %v475_v49 = vand.u32 2147483647, %v409_v26  ;;  %v477_v6 = vand.u32 2147483648, %v409_v26 }
 0x154   :  { %1643 = vpow2.f32 %v344_v55  ;;  %v2115_v54 = vpop.eup %1633  ;;  %vm471_vm6 = vweird.f32 %v409_v26 }
 0x155   :  { %v2117_v31 = vpop.eup %1635  ;;  %v410_v35 = vsel %vm187_vm0, %v2115_v54, 0.0  ;;  %1645 = vpow2.f32 %v346_v50  ;;  %v450_v36 = vrot.slane %v449_v46, 1  ;;  %vm476_vm8 = vcmp.eq.f32.partialorder %v475_v49, 8.507059e+37 }
 0x156   :  { %v2121_v33 = vpop.eup %1637  ;;  %v411_v62 = vsel %vm187_vm0, %v2117_v31, 0.0  ;;  %1647 = vpow2.f32 %v348_v27  ;;  %v478_v28 = vor.u32 1.1754944e-38, %v477_v6 }
 0x157   :  { %v2125_v2 = vpop.eup %1639  ;;  %v412_v57 = vadd.f32 %v411_v62, %v410_v35  ;;  %v413_v60 = vsel %vm187_vm0, %v2121_v33, 0.0  ;;  %1649 = vpow2.f32 %v350_v58  ;;  %v451_v1 = vadd.f32 %v450_v36, %v449_v46 }
 0x158   :  { %v415_v0 = vsel %vm187_vm0, %v2125_v2, 0.0 }
 0x159   :  { %v1642_v59 = vpop.eup %1641  ;;  %v414_v61 = vadd.f32 %v413_v60, %v412_v57  ;;  %1651 = vrcp.f32 %v451_v1  ;;  %vm499_vm9 = vweird.f32 %v451_v1  ;;  %v503_v44 = vand.u32 2147483647, %v451_v1 }
 0x15a   :  { %v2129_v47 = vpop.eup %1643  ;;  %v467_v8 = vmul.f32 %v1642_v59, %v409_v26  ;;  %vm472_vm5 = vweird.f32 %v1642_v59  ;;  %v505_v50 = vand.u32 2147483648, %v451_v1 }
 0x15b   :  { %v2133_v4 = vpop.eup %1645  ;;  %v416_v16 = vadd.f32 %v415_v0, %v414_v61  ;;  %v417_v22 = vsel %vm187_vm0, %v2129_v47, 0.0  ;;  %vm473_vm7 = vmor %vm471_vm6, %vm472_vm5  ;;  %vm504_vm12 = vcmp.eq.f32.partialorder %v503_v44, 8.507059e+37 }
 0x15c   :  { %v468_v5 = vsub.f32 1.0, %v467_v8  ;;  %v2137_v9 = vpop.eup %1647  ;;  %v419_v13 = vsel %vm187_vm0, %v2133_v4, 0.0 }
 0x15d   :  { %v418_v11 = vadd.f32 %v417_v22, %v416_v16  ;;  %v2141_v17 = vpop.eup %1649  ;;  %v421_v23 = vsel %vm187_vm0, %v2137_v9, 0.0  ;;  %v543_v22 = vsel %vm187_vm0, %v1978_v39, 0.0 }
 0x15e   :  { %v469_v12 = vmul.f32 %v1642_v59, %v468_v5  ;;  %v423_v3 = vsel %vm187_vm0, %v2141_v17, 0.0 }
 0x15f   :  { %v420_v21 = vadd.f32 %v419_v13, %v418_v11  ;;  %v1652_v32 = vpop.eup %1651 }
 0x160   :  { %v470_v18 = vadd.f32 %v1642_v59, %v469_v12  ;;  %v495_v35 = vmul.f32 %v1652_v32, %v451_v1  ;;  %vm500_vm10 = vweird.f32 %v1652_v32  ;;  %v540_v1 = vsel %vm187_vm0, %v1981_v41, 0.0 }
 0x161   :  { %v422_v40 = vadd.f32 %v421_v23, %v420_v21  ;;  %vm501_vm11 = vmor %vm499_vm9, %vm500_vm10 }
 0x162   :  { %v474_v55 = vsel %vm473_vm7, %v1642_v59, %v470_v18  ;;  %v496_v59 = vsub.f32 1.0, %v495_v35  ;;  %v549_v18 = vsel %vm187_vm0, %v1984_v45, 0.0 }
 0x163   :  { %v479_v27 = vsel %vm476_vm8, %v478_v28, %v474_v55  ;;  %v424_v46 = vadd.f32 %v423_v3, %v422_v40 }
 0x164   :  { %v2148_v26 = vmul.f32 %v2073_v30, %v479_v27  ;;  %v2151_v58 = vmul.f32 %v2069_v10, %v479_v27  ;;  %v2154_v62 = vmul.f32 %v2047_v19, %v479_v27  ;;  %v2157_v57 = vmul.f32 %v2051_v34, %v479_v27 }
 0x165   :  { %v2160_v36 = vmul.f32 %v2057_v24, %v479_v27  ;;  %v2163_v60 = vmul.f32 %v2041_v29, %v479_v27  ;;  %v425_v61 = vrot.slane %v424_v46, 4  ;;  %v497_v19 = vmul.f32 %v1652_v32, %v496_v59 }
 0x166   :  { %3200 = vst [vmem:[#allocation11_spill] sm:$0xff] %v2157_v57  ;;  %v585_v30 = vsel %vm187_vm0, %v2148_v26, 0.0  ;;  %v582_v10 = vsel %vm187_vm0, %v2151_v58, 0.0  ;;  %v506_v34 = vor.u32 1.1754944e-38, %v505_v50  ;;  %v2172_v24 = vmul.f32 %v2061_v37, %v479_v27 }
 0x167   :  { %3201 = vst [vmem:[#allocation12_spill] sm:$0xff] %v2160_v36  ;;  %586 = vadd.xlane.f32.xlu1 %v585_v30  ;;  %583 = vadd.xlane.f32.xlu0 %v582_v10  ;;  %v426_v8 = vadd.f32 %v425_v61, %v424_v46  ;;  %v2175_v29 = vmul.f32 %v2067_v63, %v479_v27 }
 0x168   :  { %3202 = vst [vmem:[#allocation13_spill] sm:$0xff] %v2172_v24  ;;  %v498_v0 = vadd.f32 %v1652_v32, %v497_v19  ;;  %v1130_v19 = vld [vmem:[%s3184_s2 + $0x70] sm:$0xff] }
 0x169   :  { %3203 = vst [vmem:[#allocation14_spill] sm:$0xff] %v2175_v29  ;;  %v427_v5 = vrot.slane %v426_v8, 2 }
 0x16a   :  { %v502_v16 = vsel %vm501_vm11, %v1652_v32, %v498_v0  ;;  %v1128_v0 = vld [vmem:[%s3184_s2 + $0x60] sm:$0xff] }
 0x16b   :  { %v428_v49 = vadd.f32 %v427_v5, %v426_v8  ;;  %v2177_v6 = vsel %vm504_vm12, %v506_v34, %v502_v16  ;;  %v1129_v34 = vld [vmem:[%s3184_s2 + $0x68] sm:$0xff]  ;;  %v567_v5 = vsel %vm187_vm0, %v2154_v62, 0.0  ;;  %v561_v16 = vsel %vm187_vm0, %v2000_v42, 0.0 }
 0x16c   :  { %v2185_v37 = vmul.f32 %v2037_v25, %v2177_v6  ;;  %v2189_v63 = vmul.f32 %v2075_v7, %v2177_v6  ;;  %v2193_v13 = vmul.f32 %v2079_v48, %v2177_v6 }
 0x16d   :  { %v429_v12 = vrot.slane %v428_v49, 1 }
 0x16e   :  { %3204 = vst [vmem:[#allocation15_spill] sm:$0xff] %v2185_v37 }
 0x16f   :  { %3205 = vst [vmem:[#allocation16_spill] sm:$0xff] %v2189_v63  ;;  %544 = vadd.xlane.f32.xlu1 %v543_v22  ;;  %541 = vadd.xlane.f32.xlu0 %v540_v1  ;;  %v430_v11 = vadd.f32 %v429_v12, %v428_v49  ;;  %v555_v49 = vsel %vm187_vm0, %v2003_v56, 0.0  ;;  %v1127_v22 = vld [vmem:[%s3184_s2 + $0x58] sm:$0xff]  ;;  %v1126_v1 = vld [vmem:[%s3184_s2 + $0x50] sm:$0xff]  ;;  %v570_v12 = vsel %vm187_vm0, %v2157_v57, 0.0 }
 0x170   :  { %3206 = vst [vmem:[#allocation17_spill] sm:$0xff] %v2193_v13 }
 0x171   :  { %1653 = vrcp.f32 %v430_v11  ;;  %v491_v23 = vand.u32 2147483648, %v430_v11  ;;  %v489_v7 = vand.u32 2147483647, %v430_v11  ;;  %vm485_vm14 = vweird.f32 %v430_v11 }
 0x173   :  { %v492_v40 = vor.u32 1.1754944e-38, %v491_v23  ;;  %vm490_vm1 = vcmp.eq.f32.partialorder %v489_v7, 8.507059e+37  ;;  %v573_v23 = vsel %vm187_vm0, %v2160_v36, 0.0  ;;  %v1123_v7 = vld [vmem:[%s3184_s2 + $0x38] sm:$0xff] }
 0x177   :  { %550 = vadd.xlane.f32.xlu1 %v549_v18  ;;  %v1654_v21 = vpop.eup %1653 }
 0x178   :  { %v481_v28 = vmul.f32 %v1654_v21, %v430_v11  ;;  %vm486_vm13 = vweird.f32 %v1654_v21 }
 0x179   :  { %vm487_vm15 = vmor %vm485_vm14, %vm486_vm13 }
 0x17a   :  { %v482_v25 = vsub.f32 1.0, %v481_v28  ;;  %v2294_v28 = vmul.f32 %v2083_v14, %v2177_v6  ;;  %v564_v14 = vsel %vm187_vm0, %v2163_v60, 0.0 }
 0x17c   :  { %v483_v32 = vmul.f32 %v1654_v21, %v482_v25  ;;  %v1124_v25 = vld [vmem:[%s3184_s2 + $0x40] sm:$0xff] }
 0x17e   :  { %v484_v55 = vadd.f32 %v1654_v21, %v483_v32  ;;  %v624_v32 = vsel %vm187_vm0, %v2294_v28, 0.0 }
 0x180   :  { %v488_v44 = vsel %vm487_vm15, %v1654_v21, %v484_v55  ;;  %v1125_v21 = vld [vmem:[%s3184_s2 + $0x48] sm:$0xff]  ;;  %v2316_v55 = vmul.f32 %v2089_v20, %v2177_v6 }
 0x181   :  { %v493_v48 = vsel %vm490_vm1, %v492_v40, %v488_v44  ;;  %v1122_v40 = vld [vmem:[%s3184_s2 + $0x30] sm:$0xff]  ;;  %v2324_v44 = vmul.f32 %v2029_v15, %v2177_v6 }
 0x182   :  { %v2198_v50 = vmul.f32 %v2125_v2, %v493_v48  ;;  %v2201_v27 = vmul.f32 %v2117_v31, %v493_v48  ;;  %v2204_v3 = vmul.f32 %v2115_v54, %v493_v48  ;;  %v2207_v35 = vmul.f32 %v2121_v33, %v493_v48 }
 0x183   :  { %v2210_v46 = vmul.f32 %v2141_v17, %v493_v48  ;;  %v2213_v59 = vmul.f32 %v2133_v4, %v493_v48  ;;  %v558_v54 = vsel %vm187_vm0, %v1989_v51, 0.0  ;;  %v552_v33 = vsel %vm187_vm0, %v1992_v52, 0.0  ;;  %v1131_v17 = vld [vmem:[%s3184_s2 + $0x78] sm:$0xff]  ;;  %3207 = vst [vmem:[#allocation18_spill] sm:$0xff] %v2324_v44 }
 0x184   :  { %v597_v30 = vsel %vm187_vm0, %v2198_v50, 0.0  ;;  %v591_v2 = vsel %vm187_vm0, %v2201_v27, 0.0  ;;  %v588_v31 = vsel %vm187_vm0, %v2204_v3, 0.0  ;;  %v546_v4 = vsel %vm187_vm0, %v1995_v53, 0.0  ;;  %1546 = vmatpush.xpose.msk.msra.mxu2 %vm187_vm0, %v1131_v17  ;;  %1490 = vmatpush.xpose.msk.msra.mxu1 %vm187_vm0, %v1131_v17 }
 0x185   :  { %598 = vadd.xlane.f32.xlu1 %v597_v30  ;;  %592 = vadd.xlane.f32.xlu0 %v591_v2  ;;  %v2233_v10 = vmul.f32 %v2137_v9, %v493_v48  ;;  %v2236_v61 = vmul.f32 %v2129_v47, %v493_v48  ;;  %v594_v47 = vsel %vm187_vm0, %v2207_v35, 0.0  ;;  %v609_v11 = vsel %vm187_vm0, %v2210_v46, 0.0  ;;  %v1121_v30 = vld [vmem:[%s3184_s2 + $0x28] sm:$0xff] }
 0x186   :  { %589 = vadd.xlane.f32.xlu2 %v588_v31  ;;  %1547 = vmatpush.xpose.msk.msrb.mxu3 %vm187_vm0, %v1131_v17  ;;  %v603_v18 = vsel %vm187_vm0, %v2213_v59, 0.0  ;;  %v576_v48 = vsel %vm187_vm0, %v2172_v24, 0.0  ;;  %v627_v20 = vsel %vm187_vm0, %v2316_v55, 0.0  ;;  %v612_v15 = vsel %vm187_vm0, %v2324_v44, 0.0 }
 0x187   :  { %v606_v8 = vsel %vm187_vm0, %v2233_v10, 0.0  ;;  %v600_v9 = vsel %vm187_vm0, %v2236_v61, 0.0  ;;  %v2342_v2 = vmul.f32 %v2093_v43, %v2177_v6  ;;  %v579_v31 = vsel %vm187_vm0, %v2175_v29, 0.0 }
 0x188   :  { %1548 = vmatpush.xpose.msk.msra.mxu2 %vm187_vm0, %v1130_v19  ;;  %1491 = vmatpush.xpose.msk.msra.mxu1 %vm187_vm0, %v1130_v19  ;;  %v618_v17 = vsel %vm187_vm0, %v2189_v63, 0.0 }
 0x18a   :  { %1549 = vmatpush.xpose.msk.msrb.mxu3 %vm187_vm0, %v1130_v19  ;;  %v1120_v19 = vld [vmem:[%s3184_s2 + $0x20] sm:$0xff] }
 0x18c   :  { %1550 = vmatpush.xpose.msk.msra.mxu2 %vm187_vm0, %v1129_v34  ;;  %1492 = vmatpush.xpose.msk.msra.mxu1 %vm187_vm0, %v1129_v34 }
 0x18d   :  { %559 = vadd.xlane.f32.xlu1 %v558_v54  ;;  %553 = vadd.xlane.f32.xlu0 %v552_v33  ;;  %v630_v54 = vsel %vm187_vm0, %v2342_v2, 0.0  ;;  %v615_v33 = vsel %vm187_vm0, %v2185_v37, 0.0 }
 0x18e   :  { %547 = vadd.xlane.f32.xlu2 %v546_v4  ;;  %1551 = vmatpush.xpose.msk.msrb.mxu3 %vm187_vm0, %v1129_v34  ;;  %v2353_v4 = vmul.f32 %v2099_v38, %v2177_v6  ;;  %v1119_v38 = vld [vmem:[%s3184_s2 + $0x18] sm:$0xff]  ;;  %v621_v6 = vsel %vm187_vm0, %v2193_v13, 0.0 }
 0x190   :  { %1552 = vmatpush.xpose.msk.msra.mxu2 %vm187_vm0, %v1128_v0  ;;  %1493 = vmatpush.xpose.msk.msra.mxu1 %vm187_vm0, %v1128_v0  ;;  %3208 = vst [vmem:[#allocation19_spill] sm:$0xff] %v2353_v4  ;;  %v633_v43 = vsel %vm187_vm0, %v2353_v4, 0.0 }
 0x192   :  { %1553 = vmatpush.xpose.msk.msrb.mxu3 %vm187_vm0, %v1128_v0 }
 0x194   :  { %1554 = vmatpush.xpose.msk.msra.mxu2 %vm187_vm0, %v1127_v22  ;;  %1494 = vmatpush.xpose.msk.msra.mxu1 %vm187_vm0, %v1127_v22 }
 0x195   :  { %607 = vadd.xlane.f32.xlu1 %v606_v8  ;;  %601 = vadd.xlane.f32.xlu0 %v600_v9  ;;  %v1118_v8 = vld [vmem:[%s3184_s2 + $0x10] sm:$0xff]  ;;  %v1117_v9 = vld [vmem:[%s3184_s2 + $0x8] sm:$0xff] }
 0x196   :  { %595 = vadd.xlane.f32.xlu2 %v594_v47  ;;  %1555 = vmatpush.xpose.msk.msrb.mxu3 %vm187_vm0, %v1127_v22  ;;  %v1116_v47 = vld [vmem:[%s3184_s2] sm:$0xff]  ;;  %s1800_s2 = smov [#allocation6]  }
 0x197   :  { %s1470_s16 = sshll.u32 %s1800_s2, 4  ;;  %s1471_s16 = int_to_ptr.vmem [resolvable:$true] %s1470_s16 }
 0x198   :  { %1556 = vmatpush.xpose.msk.msra.mxu2 %vm187_vm0, %v1126_v1  ;;  %1495 = vmatpush.xpose.msk.msra.mxu1 %vm187_vm0, %v1126_v1 }
 0x19a   :  { %1557 = vmatpush.xpose.msk.msrb.mxu3 %vm187_vm0, %v1126_v1 }
 0x19c   :  { %1558 = vmatpush.xpose.msk.msra.mxu2 %vm187_vm0, %v1125_v21  ;;  %1496 = vmatpush.xpose.msk.msra.mxu1 %vm187_vm0, %v1125_v21 }
 0x19d   :  { %568 = vadd.xlane.f32.xlu1 %v567_v5  ;;  %562 = vadd.xlane.f32.xlu0 %v561_v16 }
 0x19e   :  { %556 = vadd.xlane.f32.xlu2 %v555_v49  ;;  %1559 = vmatpush.xpose.msk.msrb.mxu3 %vm187_vm0, %v1125_v21 }
 0x1a0   :  { %1560 = vmatpush.xpose.msk.msra.mxu2 %vm187_vm0, %v1124_v25  ;;  %1497 = vmatpush.xpose.msk.msra.mxu1 %vm187_vm0, %v1124_v25 }
 0x1a2   :  { %1561 = vmatpush.xpose.msk.msrb.mxu3 %vm187_vm0, %v1124_v25 }
 0x1a4   :  { %1562 = vmatpush.xpose.msk.msra.mxu2 %vm187_vm0, %v1123_v7  ;;  %1498 = vmatpush.xpose.msk.msra.mxu1 %vm187_vm0, %v1123_v7 }
 0x1a5   :  { %571 = vadd.xlane.f32.xlu1 %v570_v12  ;;  %610 = vadd.xlane.f32.xlu0 %v609_v11 }
 0x1a6   :  { %604 = vadd.xlane.f32.xlu2 %v603_v18  ;;  %1563 = vmatpush.xpose.msk.msrb.mxu3 %vm187_vm0, %v1123_v7 }
 0x1a8   :  { %1564 = vmatpush.xpose.msk.msra.mxu2 %vm187_vm0, %v1122_v40  ;;  %1499 = vmatpush.xpose.msk.msra.mxu1 %vm187_vm0, %v1122_v40 }
 0x1aa   :  { %1565 = vmatpush.xpose.msk.msrb.mxu3 %vm187_vm0, %v1122_v40 }
 0x1ac   :  { %1566 = vmatpush.xpose.msk.msra.mxu2 %vm187_vm0, %v1121_v30  ;;  %1500 = vmatpush.xpose.msk.msra.mxu1 %vm187_vm0, %v1121_v30 }
 0x1ad   :  { %574 = vadd.xlane.f32.xlu1 %v573_v23  ;;  %625 = vadd.xlane.f32.xlu0 %v624_v32 }
 0x1ae   :  { %565 = vadd.xlane.f32.xlu2 %v564_v14  ;;  %1567 = vmatpush.xpose.msk.msrb.mxu3 %vm187_vm0, %v1121_v30 }
 0x1b0   :  { %1568 = vmatpush.xpose.msk.msra.mxu2 %vm187_vm0, %v1120_v19  ;;  %1501 = vmatpush.xpose.msk.msra.mxu1 %vm187_vm0, %v1120_v19 }
 0x1b2   :  { %1569 = vmatpush.xpose.msk.msrb.mxu3 %vm187_vm0, %v1120_v19 }
 0x1b4   :  { %1570 = vmatpush.xpose.msk.msra.mxu2 %vm187_vm0, %v1119_v38  ;;  %1502 = vmatpush.xpose.msk.msra.mxu1 %vm187_vm0, %v1119_v38 }
 0x1b5   :  { %577 = vadd.xlane.f32.xlu1 %v576_v48  ;;  %628 = vadd.xlane.f32.xlu0 %v627_v20 }
 0x1b6   :  { %613 = vadd.xlane.f32.xlu2 %v612_v15  ;;  %1571 = vmatpush.xpose.msk.msrb.mxu3 %vm187_vm0, %v1119_v38 }
 0x1b8   :  { %1572 = vmatpush.xpose.msk.msra.mxu2 %vm187_vm0, %v1118_v8  ;;  %1503 = vmatpush.xpose.msk.msra.mxu1 %vm187_vm0, %v1118_v8 }
 0x1ba   :  { %1573 = vmatpush.xpose.msk.msrb.mxu3 %vm187_vm0, %v1118_v8 }
 0x1bc   :  { %1574 = vmatpush.xpose.msk.msra.mxu2 %vm187_vm0, %v1117_v9  ;;  %1504 = vmatpush.xpose.msk.msra.mxu1 %vm187_vm0, %v1117_v9 }
 0x1bd   :  { %580 = vadd.xlane.f32.xlu1 %v579_v31  ;;  %631 = vadd.xlane.f32.xlu0 %v630_v54 }
 0x1be   :  { %616 = vadd.xlane.f32.xlu2 %v615_v33  ;;  %1575 = vmatpush.xpose.msk.msrb.mxu3 %vm187_vm0, %v1117_v9 }
 0x1c0   :  { %1576 = vmatpush.xpose.msk.msra.mxu2 %vm187_vm0, %v1116_v47  ;;  %1505 = vmatpush.xpose.msk.msra.mxu1 %vm187_vm0, %v1116_v47 }
 0x1c2   :  { %1577 = vmatpush.xpose.msk.msrb.mxu3 %vm187_vm0, %v1116_v47 }
 0x1c5   :  { %634 = vadd.xlane.f32.xlu0 %v633_v43 }
 0x1c6   :  { %619 = vadd.xlane.f32.xlu2 %v618_v17 }
 0x1ce   :  { %622 = vadd.xlane.f32.xlu2 %v621_v6 }
 0x1da   :  { %v587_v34 = vpop.xlane.xlu1 %586  ;;  %v584_v0 = vpop.xlane.xlu0 %583 }
 0x1db   :  { %1655 = vrcp.f32 %v587_v34  ;;  %v857_v25 = vand.u32 2147483648, %v587_v34  ;;  %v843_v23 = vand.u32 2147483648, %v584_v0  ;;  %v841_v14 = vand.u32 2147483647, %v584_v0 }
 0x1dc   :  { %1657 = vrcp.f32 %v584_v0  ;;  %v855_v7 = vand.u32 2147483647, %v587_v34  ;;  %vm851_vm3 = vweird.f32 %v587_v34  ;;  %vm837_vm5 = vweird.f32 %v584_v0 }
 0x1dd   :  { %v858_v31 = vor.u32 1.1754944e-38, %v857_v25  ;;  %v844_v54 = vor.u32 1.1754944e-38, %v843_v23  ;;  %vm842_vm8 = vcmp.eq.f32.partialorder %v841_v14, 8.507059e+37 }
 0x1de   :  { %vm856_vm9 = vcmp.eq.f32.partialorder %v855_v7, 8.507059e+37 }
 0x1e1   :  { %v1656_v5 = vpop.eup %1655 }
 0x1e2   :  { %v1658_v16 = vpop.eup %1657  ;;  %v847_v49 = vmul.f32 %v1656_v5, %v587_v34  ;;  %v545_v22 = vpop.xlane.xlu1 %544  ;;  %vm852_vm2 = vweird.f32 %v1656_v5 }
 0x1e3   :  { %v2391_v1 = vpop.xlane.xlu0 %541  ;;  %v833_v12 = vmul.f32 %v1658_v16, %v584_v0  ;;  %1659 = vrcp.f32 %v545_v22  ;;  %vm838_vm4 = vweird.f32 %v1658_v16  ;;  %vm2394_vm6 = vmor %vm851_vm3, %vm852_vm2  ;;  %v661_v6 = vand.u32 2147483648, %v545_v22 }
 0x1e4   :  { %v848_v11 = vsub.f32 1.0, %v847_v49  ;;  %1661 = vrcp.f32 %v2391_v1  ;;  %vm839_vm7 = vmor %vm837_vm5, %vm838_vm4  ;;  %v647_v34 = vand.u32 2147483648, %v2391_v1  ;;  %vm655_vm12 = vweird.f32 %v545_v22 }
 0x1e5   :  { %v834_v18 = vsub.f32 1.0, %v833_v12  ;;  %v662_v23 = vor.u32 1.1754944e-38, %v661_v6  ;;  %vm641_vm13 = vweird.f32 %v2391_v1 }
 0x1e6   :  { %v849_v21 = vmul.f32 %v1656_v5, %v848_v11  ;;  %v659_v11 = vand.u32 2147483647, %v545_v22 }
 0x1e7   :  { %v835_v32 = vmul.f32 %v1658_v16, %v834_v18 }
 0x1e8   :  { %v850_v40 = vadd.f32 %v1656_v5, %v849_v21  ;;  %v645_v21 = vand.u32 2147483647, %v2391_v1  ;;  %vm660_vm1 = vcmp.eq.f32.partialorder %v659_v11, 8.507059e+37 }
 0x1e9   :  { %v1660_v48 = vpop.eup %1659  ;;  %v836_v20 = vadd.f32 %v1658_v16, %v835_v32 }
 0x1ea   :  { %v1662_v15 = vpop.eup %1661  ;;  %v651_v33 = vmul.f32 %v1660_v48, %v545_v22  ;;  %v2398_v43 = vpop.xlane.xlu1 %550  ;;  %v854_v17 = vsel %vm2394_vm6, %v1656_v5, %v850_v40  ;;  %vm656_vm10 = vweird.f32 %v1660_v48  ;;  %vm646_vm2 = vcmp.eq.f32.partialorder %v645_v21, 8.507059e+37 }
 0x1eb   :  { %v637_v19 = vmul.f32 %v1662_v15, %v2391_v1  ;;  %1663 = vrcp.f32 %v2398_v43  ;;  %v840_v8 = vsel %vm839_vm7, %v1658_v16, %v836_v20  ;;  %v859_v9 = vsel %vm856_vm9, %v858_v31, %v854_v17  ;;  %vm657_vm14 = vmor %vm655_vm12, %vm656_vm10 }
 0x1ec   :  { %v652_v38 = vsub.f32 1.0, %v651_v33  ;;  %v845_v0 = vsel %vm842_vm8, %v844_v54, %v840_v8  ;;  %v1099_v49 = vmul.f32 %v859_v9, %v2148_v26  ;;  %vm642_vm11 = vweird.f32 %v1662_v15 }
 0x1ed   :  { %v638_v47 = vsub.f32 1.0, %v637_v19  ;;  %v1098_v5 = vmul.f32 %v845_v0, %v2151_v58  ;;  %v648_v58 = vor.u32 1.1754944e-38, %v647_v34  ;;  %vm643_vm15 = vmor %vm641_vm13, %vm642_vm11  ;;  %v689_v1 = vand.u32 2147483648, %v2398_v43 }
 0x1ee   :  { %v653_v12 = vmul.f32 %v1660_v48, %v652_v38  ;;  %1436 = vst.msk [vmem:[#allocation6 + $0x78] sm:$0xff] %vm187_vm0, %v1099_v49  ;;  %vm683_vm4 = vweird.f32 %v2398_v43 }
 0x1ef   :  { %v639_v18 = vmul.f32 %v1662_v15, %v638_v47  ;;  %1520 = vmatmul.msk.f32.vlgmr.msra.gmra.mxu2 %vm187_vm0, %v1098_v5  ;;  %1435 = vst.msk [vmem:[#allocation6 + $0x70] sm:$0xff] %vm187_vm0, %v1098_v5  ;;  %v690_v17 = vor.u32 1.1754944e-38, %v689_v1 }
 0x1f0   :  { %v654_v16 = vadd.f32 %v1660_v48, %v653_v12 }
 0x1f1   :  { %v1664_v25 = vpop.eup %1663  ;;  %v640_v26 = vadd.f32 %v1662_v15, %v639_v18 }
 0x1f2   :  { %v679_v32 = vmul.f32 %v1664_v25, %v2398_v43  ;;  %v658_v14 = vsel %vm657_vm14, %v1660_v48, %v654_v16  ;;  %vm684_vm3 = vweird.f32 %v1664_v25 }
 0x1f3   :  { %v644_v7 = vsel %vm643_vm15, %v1662_v15, %v640_v26  ;;  %v663_v22 = vsel %vm660_vm1, %v662_v23, %v658_v14  ;;  %vm685_vm5 = vmor %vm683_vm4, %vm684_vm3 }
 0x1f4   :  { %v680_v40 = vsub.f32 1.0, %v679_v32  ;;  %v649_v20 = vsel %vm646_vm2, %v648_v58, %v644_v7  ;;  %v1085_v30 = vmul.f32 %v663_v22, %v1978_v39  ;;  %v687_v39 = vand.u32 2147483647, %v2398_v43 }
 0x1f5   :  { %v1084_v31 = vmul.f32 %v649_v20, %v1981_v41 }
 0x1f6   :  { %v681_v54 = vmul.f32 %v1664_v25, %v680_v40  ;;  %1422 = vst.msk [vmem:[#allocation6 + $0x8] sm:$0xff] %vm187_vm0, %v1085_v30  ;;  %vm688_vm6 = vcmp.eq.f32.partialorder %v687_v39, 8.507059e+37 }
 0x1f7   :  { %1506 = vmatmul.msk.f32.vlgmr.msra.gmra.mxu1 %vm187_vm0, %v1084_v31  ;;  %1421 = vst.msk [vmem:[#allocation6] sm:$0xff] %vm187_vm0, %v1084_v31  ;;  %1521 = vmatmul.msk.f32.gmra.mxu2 %vm187_vm0, %v1099_v49 }
 0x1f8   :  { %v2420_v48 = vpop.xlane.xlu1 %598  ;;  %v2422_v15 = vpop.xlane.xlu0 %592  ;;  %v682_v33 = vadd.f32 %v1664_v25, %v681_v54 }
 0x1f9   :  { %v590_v41 = vpop.xlane.xlu2 %589  ;;  %1665 = vrcp.f32 %v2422_v15  ;;  %v885_v11 = vand.u32 2147483648, %v2422_v15  ;;  %vm879_vm7 = vweird.f32 %v2422_v15  ;;  %v883_v20 = vand.u32 2147483647, %v2422_v15 }
 0x1fa   :  { %1667 = vrcp.f32 %v590_v41  ;;  %v686_v19 = vsel %vm685_vm5, %v1664_v25, %v682_v33  ;;  %vm865_vm8 = vweird.f32 %v590_v41  ;;  %v871_v26 = vand.u32 2147483648, %v590_v41 }
 0x1fb   :  { %1669 = vrcp.f32 %v2420_v48  ;;  %v691_v38 = vsel %vm688_vm6, %v690_v17, %v686_v19  ;;  %v886_v32 = vor.u32 1.1754944e-38, %v885_v11  ;;  %v869_v40 = vand.u32 2147483647, %v590_v41 }
 0x1fc   :  { %v2430_v6 = vmul.f32 %v691_v38, %v1984_v45  ;;  %v913_v45 = vand.u32 2147483648, %v2420_v48  ;;  %v872_v19 = vor.u32 1.1754944e-38, %v871_v26  ;;  %vm2479_vm13 = vcmp.eq.f32.partialorder %v883_v20, 8.507059e+37 }
 0x1fd   :  { %vm870_vm12 = vcmp.eq.f32.partialorder %v869_v40, 8.507059e+37  ;;  %vm907_vm2 = vweird.f32 %v2420_v48 }
 0x1fe   :  { %1424 = vst.msk [vmem:[#allocation6 + $0x18] sm:$0xff] %vm187_vm0, %v2430_v6  ;;  %v2454_v23 = vor.u32 1.1754944e-38, %v913_v45 }
 0x1ff   :  { %1507 = vmatmul.msk.f32.gmra.mxu1 %vm187_vm0, %v1085_v30  ;;  %v2432_v8 = vpop.eup %1665 }
 0x200   :  { %v2434_v9 = vpop.xlane.xlu1 %559  ;;  %v2436_v43 = vpop.xlane.xlu0 %553  ;;  %v875_v34 = vmul.f32 %v2432_v8, %v2422_v15  ;;  %vm880_vm10 = vweird.f32 %v2432_v8 }
 0x201   :  { %v1668_v47 = vpop.eup %1667  ;;  %v2442_v0 = vpop.xlane.xlu2 %547  ;;  %1671 = vrcp.f32 %v2436_v43  ;;  %v731_v14 = vand.u32 2147483648, %v2434_v9  ;;  %vm697_vm15 = vweird.f32 %v2436_v43  ;;  %vm881_vm1 = vmor %vm879_vm7, %vm880_vm10 }
 0x202   :  { %v2444_v49 = vpop.eup %1669  ;;  %v861_v12 = vmul.f32 %v1668_v47, %v590_v41  ;;  %v876_v5 = vsub.f32 1.0, %v875_v34  ;;  %1673 = vrcp.f32 %v2442_v0  ;;  %vm866_vm9 = vweird.f32 %v1668_v47 }
 0x203   :  { %v903_v21 = vmul.f32 %v2444_v49, %v2420_v48  ;;  %1675 = vrcp.f32 %v2434_v9  ;;  %v911_v34 = vand.u32 2147483647, %v2420_v48  ;;  %vm867_vm11 = vmor %vm865_vm8, %vm866_vm9  ;;  %vm908_vm14 = vweird.f32 %v2444_v49 }
 0x204   :  { %v862_v18 = vsub.f32 1.0, %v861_v12  ;;  %v877_v16 = vmul.f32 %v2432_v8, %v876_v5  ;;  %v2486_v11 = vor.u32 1.1754944e-38, %v731_v14  ;;  %vm669_vm3 = vweird.f32 %v2442_v0 }
 0x205   :  { %v904_v31 = vsub.f32 1.0, %v903_v21  ;;  %vm2529_vm5 = vcmp.eq.f32.partialorder %v911_v34, 8.507059e+37 }
 0x206   :  { %v863_v25 = vmul.f32 %v1668_v47, %v862_v18  ;;  %v878_v17 = vadd.f32 %v2432_v8, %v877_v16  ;;  %v675_v18 = vand.u32 2147483648, %v2442_v0 }
 0x207   :  { %v2457_v58 = vpop.eup %1671  ;;  %v905_v41 = vmul.f32 %v2444_v49, %v904_v31  ;;  %v703_v31 = vand.u32 2147483648, %v2436_v43 }
 0x208   :  { %v2460_v7 = vpop.xlane.xlu1 %607  ;;  %v2462_v22 = vpop.xlane.xlu0 %601  ;;  %v693_v54 = vmul.f32 %v2457_v58, %v2436_v43  ;;  %v864_v33 = vadd.f32 %v1668_v47, %v863_v25  ;;  %v882_v26 = vsel %vm881_vm1, %v2432_v8, %v878_v17  ;;  %vm698_vm6 = vweird.f32 %v2457_v58 }
 0x209   :  { %v2465_v30 = vpop.eup %1673  ;;  %v2469_v1 = vpop.xlane.xlu2 %595  ;;  %1677 = vrcp.f32 %v2462_v22  ;;  %v887_v40 = vsel %vm2479_vm13, %v886_v32, %v882_v26  ;;  %vm2555_vm9 = vmor %vm697_vm15, %vm698_vm6 }
 0x20a   :  { %v665_v39 = vmul.f32 %v2465_v30, %v2442_v0  ;;  %v694_v38 = vsub.f32 1.0, %v693_v54  ;;  %1679 = vrcp.f32 %v2469_v1  ;;  %v2484_v5 = vpop.eup %1675  ;;  %v868_v21 = vsel %vm867_vm11, %v1668_v47, %v864_v33  ;;  %vm2573_vm11 = vmor %vm907_vm2, %vm908_vm14 }
 0x20b   :  { %v873_v25 = vsel %vm870_vm12, %v872_v19, %v868_v21  ;;  %1681 = vrcp.f32 %v2460_v7  ;;  %v721_v20 = vmul.f32 %v2484_v5, %v2434_v9  ;;  %v1101_v33 = vmul.f32 %v887_v40, %v2201_v27 }
 0x20c   :  { %v666_v12 = vsub.f32 1.0, %v665_v39  ;;  %v695_v14 = vmul.f32 %v2457_v58, %v694_v38  ;;  %v1100_v47 = vmul.f32 %v873_v25, %v2204_v3  ;;  %v676_v3 = vor.u32 1.1754944e-38, %v675_v18 }
 0x20d   :  { %vm670_vm4 = vweird.f32 %v2465_v30  ;;  %v673_v19 = vand.u32 2147483647, %v2442_v0  ;;  %v955_v38 = vand.u32 2147483648, %v2460_v7  ;;  %1438 = vst.msk [vmem:[#allocation6 + $0x88] sm:$0xff] %vm187_vm0, %v1101_v33  ;;  %v906_v21 = vadd.f32 %v2444_v49, %v905_v41 }
 0x20e   :  { %v667_v16 = vmul.f32 %v2465_v30, %v666_v12  ;;  %1522 = vmatmul.msk.f32.gmra.mxu2 %vm187_vm0, %v1100_v47  ;;  %1437 = vst.msk [vmem:[#allocation6 + $0x80] sm:$0xff] %vm187_vm0, %v1100_v47  ;;  %v701_v12 = vand.u32 2147483647, %v2436_v43  ;;  %v696_v18 = vadd.f32 %v2457_v58, %v695_v14  ;;  %vm671_vm7 = vmor %vm669_vm3, %vm670_vm4  ;;  %v704_v47 = vor.u32 1.1754944e-38, %v703_v31 }
 0x20f   :  { %v2503_v15 = vpop.eup %1677  ;;  %vm674_vm8 = vcmp.eq.f32.partialorder %v673_v19, 8.507059e+37  ;;  %v2548_v40 = vor.u32 1.1754944e-38, %v955_v38  ;;  %v910_v48 = vsel %vm2573_vm11, %v2444_v49, %v906_v21  ;;  %vm893_vm13 = vweird.f32 %v2469_v1 }
 0x210   :  { %v2509_v54 = vpop.xlane.xlu1 %568  ;;  %v2511_v8 = vpop.xlane.xlu0 %562  ;;  %v668_v17 = vadd.f32 %v2465_v30, %v667_v16  ;;  %v722_v16 = vsub.f32 1.0, %v721_v20  ;;  %v917_v25 = vmul.f32 %v2503_v15, %v2462_v22  ;;  %vm2559_vm10 = vcmp.eq.f32.partialorder %v701_v12, 8.507059e+37 }
 0x211   :  { %v2514_v39 = vpop.eup %1679  ;;  %v2518_v32 = vpop.xlane.xlu2 %556  ;;  %1683 = vrcp.f32 %v2509_v54  ;;  %vm921_vm14 = vweird.f32 %v2462_v22  ;;  %vm726_vm3 = vweird.f32 %v2484_v5  ;;  %vm922_vm4 = vweird.f32 %v2503_v15 }
 0x212   :  { %v889_v27 = vmul.f32 %v2514_v39, %v2469_v1  ;;  %1685 = vrcp.f32 %v2518_v32  ;;  %v2544_v34 = vpop.eup %1681  ;;  %v672_v14 = vsel %vm671_vm7, %v2465_v30, %v668_v17  ;;  %v927_v30 = vand.u32 2147483648, %v2462_v22 }
 0x213   :  { %1687 = vrcp.f32 %v2511_v8  ;;  %v899_v17 = vand.u32 2147483648, %v2469_v1  ;;  %v2580_v12 = vmul.f32 %v2484_v5, %v722_v16  ;;  %vm894_vm12 = vweird.f32 %v2514_v39 }
 0x214   :  { %v890_v26 = vsub.f32 1.0, %v889_v27  ;;  %v677_v27 = vsel %vm674_vm8, %v676_v3, %v672_v14  ;;  %v700_v3 = vsel %vm2555_vm9, %v2457_v58, %v696_v18  ;;  %vm895_vm15 = vmor %vm893_vm13, %vm894_vm12  ;;  %v928_v45 = vor.u32 1.1754944e-38, %v927_v30 }
 0x215   :  { %v1086_v19 = vmul.f32 %v677_v27, %v1995_v53  ;;  %v945_v53 = vmul.f32 %v2544_v34, %v2460_v7  ;;  %v897_v27 = vand.u32 2147483647, %v2469_v1  ;;  %v900_v21 = vor.u32 1.1754944e-38, %v899_v17  ;;  %vm923_vm8 = vmor %vm921_vm14, %vm922_vm4 }
 0x216   :  { %v891_v20 = vmul.f32 %v2514_v39, %v890_v26  ;;  %v918_v26 = vsub.f32 1.0, %v917_v25  ;;  %1523 = vmatmul.msk.f32.gmra.mxu2 %vm187_vm0, %v1101_v33  ;;  %v705_v33 = vsel %vm2559_vm10, %v704_v47, %v700_v3  ;;  %v717_v24 = vand.u32 2147483648, %v2518_v32 }
 0x217   :  { %v2577_v38 = vpop.eup %1683  ;;  %1508 = vmatmul.msk.f32.gmra.mxu1 %vm187_vm0, %v1086_v19  ;;  %1423 = vst.msk [vmem:[#allocation6 + $0x10] sm:$0xff] %vm187_vm0, %v1086_v19  ;;  %v773_v19 = vand.u32 2147483648, %v2509_v54  ;;  %v946_v43 = vsub.f32 1.0, %v945_v53  ;;  %vm898_vm1 = vcmp.eq.f32.partialorder %v897_v27, 8.507059e+37  ;;  %vm711_vm6 = vweird.f32 %v2518_v32 }
 0x218   :  { %v2584_v14 = vpop.xlane.xlu1 %571  ;;  %v2586_v58 = vpop.xlane.xlu0 %610  ;;  %v892_v25 = vadd.f32 %v2514_v39, %v891_v20  ;;  %v915_v20 = vsel %vm2529_vm5, %v2454_v23, %v910_v48  ;;  %v919_v1 = vmul.f32 %v2503_v15, %v918_v26  ;;  %v763_v41 = vmul.f32 %v2577_v38, %v2509_v54 }
 0x219   :  { %v2591_v18 = vpop.eup %1685  ;;  %1689 = vrcp.f32 %v2584_v14  ;;  %v2597_v16 = vpop.xlane.xlu2 %604  ;;  %v2625_v23 = vmul.f32 %v705_v33, %v1992_v52  ;;  %v2629_v53 = vmul.f32 %v915_v20, %v2198_v50  ;;  %v2633_v48 = vor.u32 1.1754944e-38, %v773_v19 }
 0x21a   :  { %v2602_v0 = vpop.eup %1687  ;;  %v707_v49 = vmul.f32 %v2591_v18, %v2518_v32  ;;  %1691 = vrcp.f32 %v2586_v58  ;;  %v896_v31 = vsel %vm895_vm15, %v2514_v39, %v892_v25  ;;  %v764_v50 = vsub.f32 1.0, %v763_v41 }
 0x21b   :  { %1693 = vrcp.f32 %v2597_v16  ;;  %v735_v47 = vmul.f32 %v2602_v0, %v2511_v8  ;;  %v901_v3 = vsel %vm898_vm1, %v900_v21, %v896_v31  ;;  %1425 = vst.msk [vmem:[#allocation6 + $0x20] sm:$0xff] %vm187_vm0, %v2625_v23  ;;  %v787_v30 = vand.u32 2147483648, %v2584_v14 }
 0x21c   :  { %v708_v29 = vsub.f32 1.0, %v707_v49  ;;  %v745_v49 = vand.u32 2147483648, %v2511_v8  ;;  %v1102_v39 = vmul.f32 %v901_v3, %v2207_v35  ;;  %1440 = vst.msk [vmem:[#allocation6 + $0x98] sm:$0xff] %vm187_vm0, %v2629_v53  ;;  %v715_v35 = vand.u32 2147483647, %v2518_v32 }
 0x21d   :  { %v736_v21 = vsub.f32 1.0, %v735_v47  ;;  %vm712_vm2 = vweird.f32 %v2591_v18  ;;  %v920_v19 = vadd.f32 %v2503_v15, %v919_v1  ;;  %vm725_vm5 = vweird.f32 %v2434_v9 }
 0x21e   :  { %v709_v17 = vmul.f32 %v2591_v18, %v708_v29  ;;  %v2643_v29 = vmul.f32 %v2544_v34, %v946_v43  ;;  %1524 = vmatmul.msk.f32.gmra.mxu2 %vm187_vm0, %v1102_v39  ;;  %1439 = vst.msk [vmem:[#allocation6 + $0x90] sm:$0xff] %vm187_vm0, %v1102_v39  ;;  %v2670_v43 = vor.u32 1.1754944e-38, %v745_v49  ;;  %v718_v47 = vor.u32 1.1754944e-38, %v717_v24  ;;  %vm713_vm7 = vmor %vm711_vm6, %vm712_vm2 }
 0x21f   :  { %v2631_v26 = vpop.eup %1689  ;;  %1509 = vmatmul.msk.f32.gmra.mxu1 %vm187_vm0, %v2430_v6  ;;  %v925_v6 = vand.u32 2147483647, %v2462_v22  ;;  %v2675_v31 = vor.u32 1.1754944e-38, %v787_v30  ;;  %v2685_v49 = vmul.f32 %v2577_v38, %v764_v50  ;;  %v2688_v24 = vmul.f32 %v2602_v0, %v736_v21  ;;  %vm727_vm13 = vmor %vm725_vm5, %vm726_vm3 }
 0x220   :  { %v2640_v52 = vpop.eup %1691  ;;  %v2646_v25 = vpop.xlane.xlu1 %574  ;;  %v710_v20 = vadd.f32 %v2591_v18, %v709_v17  ;;  %v777_v1 = vmul.f32 %v2631_v26, %v2584_v14  ;;  %v969_v32 = vand.u32 2147483648, %v2586_v58  ;;  %v941_v39 = vand.u32 2147483648, %v2597_v16 }
 0x221   :  { %v2648_v27 = vpop.xlane.xlu0 %625  ;;  %v2653_v33 = vpop.eup %1693  ;;  %1695 = vrcp.f32 %v2646_v25  ;;  %3221 = vst [vmem:[#allocation20_spill] sm:$0xff] %v2675_v31  ;;  %v959_v3 = vmul.f32 %v2640_v52, %v2586_v58  ;;  %vm716_vm9 = vcmp.eq.f32.partialorder %v715_v35, 8.507059e+37  ;;  %v924_v13 = vsel %vm923_vm8, %v2503_v15, %v920_v19 }
 0x222   :  { %v2660_v41 = vpop.xlane.xlu2 %565  ;;  %1697 = vrcp.f32 %v2648_v27  ;;  %v931_v17 = vmul.f32 %v2653_v33, %v2597_v16  ;;  %v714_v30 = vsel %vm713_vm7, %v2591_v18, %v710_v20  ;;  %vm926_vm10 = vcmp.eq.f32.partialorder %v925_v6, 8.507059e+37 }
 0x223   :  { %1699 = vrcp.f32 %v2660_v41  ;;  %v778_v63 = vsub.f32 1.0, %v777_v1  ;;  %v801_v21 = vand.u32 2147483648, %v2646_v25  ;;  %v719_v36 = vsel %vm716_vm9, %v718_v47, %v714_v30 }
 0x224   :  { %v929_v37 = vsel %vm926_vm10, %v928_v45, %v924_v13  ;;  %v960_v31 = vsub.f32 1.0, %v959_v3  ;;  %v932_v44 = vsub.f32 1.0, %v931_v17  ;;  %v1089_v18 = vmul.f32 %v719_v36, %v2003_v56 }
 0x225   :  { %v1104_v15 = vmul.f32 %v929_v37, %v2236_v61  ;;  %v724_v56 = vadd.f32 %v2484_v5, %v2580_v12  ;;  %vm935_vm11 = vweird.f32 %v2597_v16  ;;  %v1037_v37 = vand.u32 2147483647, %v2648_v27 }
 0x226   :  { %1525 = vmatmul.msk.f32.gmra.mxu2 %vm187_vm0, %v2629_v53  ;;  %v1039_v61 = vand.u32 2147483648, %v2648_v27  ;;  %1426 = vst.msk [vmem:[#allocation6 + $0x28] sm:$0xff] %vm187_vm0, %v1089_v18  ;;  %v2730_v45 = vor.u32 1.1754944e-38, %v969_v32  ;;  %v2732_v53 = vor.u32 1.1754944e-38, %v941_v39  ;;  %v2737_v12 = vmul.f32 %v2631_v26, %v778_v63 }
 0x227   :  { %v2698_v50 = vpop.eup %1695  ;;  %1510 = vmatmul.msk.f32.gmra.mxu1 %vm187_vm0, %v2625_v23  ;;  %v759_v23 = vand.u32 2147483648, %v2660_v41  ;;  %1441 = vst.msk [vmem:[#allocation6 + $0xa0] sm:$0xff] %vm187_vm0, %v1104_v15  ;;  %v933_v6 = vmul.f32 %v2653_v33, %v932_v44  ;;  %v2740_v47 = vor.u32 1.1754944e-38, %v801_v21  ;;  %vm1033_vm12 = vweird.f32 %v2648_v27 }
 0x228   :  { %3222 = vst [vmem:[#allocation21_spill] sm:$0xff] %v2698_v50  ;;  %v2701_v57 = vpop.eup %1697  ;;  %v2703_v4 = vpop.xlane.xlu1 %577  ;;  %v791_v35 = vmul.f32 %v2698_v50, %v2646_v25  ;;  %v2750_v3 = vmul.f32 %v2640_v52, %v960_v31  ;;  %v728_v63 = vsel %vm727_vm13, %v2484_v5, %v724_v56  ;;  %v3225_v44 = vand.u32 2147483647, %v2434_v9 }
 0x229   :  { %v2705_v22 = vpop.xlane.xlu0 %628  ;;  %v1029_v19 = vmul.f32 %v2701_v57, %v2648_v27  ;;  %1701 = vrcp.f32 %v2703_v4  ;;  %v2722_v36 = vpop.eup %1699  ;;  %3223 = vst [vmem:[#allocation22_spill] sm:$0xff] %v2737_v12  ;;  %vm2756_vm15 = vcmp.eq.f32.partialorder %v1037_v37, 8.507059e+37  ;;  %v1040_v30 = vor.u32 1.1754944e-38, %v1039_v61 }
 0x22a   :  { %v2718_v13 = vpop.xlane.xlu2 %613  ;;  %1703 = vrcp.f32 %v2705_v22  ;;  %3224 = vst [vmem:[#allocation23_spill] sm:$0xff] %v2740_v47  ;;  %v749_v1 = vmul.f32 %v2722_v36, %v2660_v41  ;;  %v792_v17 = vsub.f32 1.0, %v791_v35  ;;  %vm730_vm14 = vcmp.eq.f32.partialorder %v3225_v44, 8.507059e+37 }
 0x22b   :  { %v1030_v20 = vsub.f32 1.0, %v1029_v19  ;;  %1705 = vrcp.f32 %v2718_v13  ;;  %v2760_v21 = vor.u32 1.1754944e-38, %v759_v23  ;;  %v733_v19 = vsel %vm730_vm14, %v2486_v11, %v728_v63 }
 0x22c   :  { %v815_v31 = vand.u32 2147483648, %v2703_v4  ;;  %v1053_v5 = vand.u32 2147483648, %v2705_v22  ;;  %v983_v9 = vand.u32 2147483648, %v2718_v13  ;;  %v1090_v35 = vmul.f32 %v733_v19, %v1989_v51 }
 0x22d   :  { %v1031_v32 = vmul.f32 %v2701_v57, %v1030_v20  ;;  %vm739_vm1 = vweird.f32 %v2511_v8  ;;  %v750_v37 = vsub.f32 1.0, %v749_v1  ;;  %v934_v20 = vadd.f32 %v2653_v33, %v933_v6 }
 0x22e   :  { %vm936_vm2 = vweird.f32 %v2653_v33  ;;  %v2783_v51 = vmul.f32 %v2698_v50, %v792_v17  ;;  %vm1034_vm3 = vweird.f32 %v2701_v57  ;;  %1526 = vmatmul.msk.f32.gmra.mxu2 %vm187_vm0, %v1104_v15  ;;  %1427 = vst.msk [vmem:[#allocation6 + $0x30] sm:$0xff] %vm187_vm0, %v1090_v35  ;;  %v939_v17 = vand.u32 2147483647, %v2597_v16 }
 0x22f   :  { %v2763_v47 = vpop.eup %1701  ;;  %1511 = vmatmul.msk.f32.gmra.mxu1 %vm187_vm0, %v1089_v18  ;;  %v1032_v6 = vadd.f32 %v2701_v57, %v1031_v32  ;;  %v2797_v50 = vor.u32 1.1754944e-38, %v815_v31  ;;  %v2803_v15 = vor.u32 1.1754944e-38, %v983_v9  ;;  %vm2809_vm4 = vmor %vm935_vm11, %vm936_vm2  ;;  %vm740_vm6 = vweird.f32 %v2602_v0 }
 0x230   :  { %3228 = vst [vmem:[#allocation24_spill] sm:$0xff] %v2763_v47  ;;  %v2769_v56 = vpop.eup %1703  ;;  %v805_v61 = vmul.f32 %v2763_v47, %v2703_v4  ;;  %v2774_v23 = vpop.xlane.xlu1 %580  ;;  %v938_v31 = vsel %vm2809_vm4, %v2653_v33, %v934_v20  ;;  %vm2826_vm5 = vmor %vm1033_vm12, %vm1034_vm3  ;;  %vm949_vm7 = vweird.f32 %v2460_v7  ;;  %vm940_vm8 = vcmp.eq.f32.partialorder %v939_v17, 8.507059e+37 }
 0x231   :  { %v2776_v11 = vpop.xlane.xlu0 %631  ;;  %v2780_v63 = vpop.eup %1705  ;;  %3229 = vst [vmem:[#allocation25_spill] sm:$0xff] %v2783_v51  ;;  %v1043_v1 = vmul.f32 %v2769_v56, %v2705_v22  ;;  %1707 = vrcp.f32 %v2774_v23  ;;  %v2799_v51 = vor.u32 1.1754944e-38, %v1053_v5  ;;  %v738_v5 = vadd.f32 %v2602_v0, %v2688_v24  ;;  %vm2870_vm10 = vmor %vm739_vm1, %vm740_vm6 }
 0x232   :  { %v2791_v44 = vpop.xlane.xlu2 %616  ;;  %v806_v19 = vsub.f32 1.0, %v805_v61  ;;  %1709 = vrcp.f32 %v2776_v11  ;;  %3230 = vst [vmem:[#allocation26_spill] sm:$0xff] %v2797_v50  ;;  %v973_v18 = vmul.f32 %v2780_v63, %v2718_v13  ;;  %v2814_v61 = vmul.f32 %v2722_v36, %v750_v37 }
 0x233   :  { %1711 = vrcp.f32 %v2791_v44  ;;  %v1044_v9 = vsub.f32 1.0, %v1043_v1  ;;  %v829_v50 = vand.u32 2147483648, %v2774_v23  ;;  %v1067_v24 = vand.u32 2147483648, %v2776_v11 }
 0x234   :  { %v2835_v33 = vmul.f32 %v2763_v47, %v806_v19  ;;  %v1036_v27 = vsel %vm2826_vm5, %v2701_v57, %v1032_v6  ;;  %vm1047_vm9 = vweird.f32 %v2705_v22  ;;  %v974_v1 = vsub.f32 1.0, %v973_v18 }
 0x235   :  { %v997_v32 = vand.u32 2147483648, %v2791_v44  ;;  %v943_v37 = vsel %vm940_vm8, %v2732_v53, %v938_v31  ;;  %v1041_v19 = vsel %vm2756_vm15, %v1040_v30, %v1036_v27  ;;  %v743_v18 = vand.u32 2147483647, %v2511_v8 }
 0x236   :  { %3235 = vst [vmem:[#allocation27_spill] sm:$0xff] %v2835_v33  ;;  %v1105_v16 = vmul.f32 %v943_v37, %v2213_v59  ;;  %v1112_v57 = vmul.f32 %v1041_v19, %v2294_v28  ;;  %v1045_v33 = vmul.f32 %v2769_v56, %v1044_v9  ;;  %v2858_v12 = vor.u32 1.1754944e-38, %v829_v50 }
 0x237   :  { %v2841_v20 = vpop.eup %1707  ;;  %1512 = vmatmul.msk.f32.gmra.mxu1 %vm187_vm0, %v1090_v35  ;;  %v742_v8 = vsel %vm2870_vm10, %v2602_v0, %v738_v5  ;;  %v2885_v35 = vmul.f32 %v2780_v63, %v974_v1  ;;  %v2887_v9 = vor.u32 1.1754944e-38, %v1067_v24  ;;  %vm753_vm11 = vweird.f32 %v2660_v41 }
 0x238   :  { %v2848_v47 = vpop.eup %1709  ;;  %v819_v17 = vmul.f32 %v2841_v20, %v2774_v23  ;;  %1527 = vmatmul.msk.f32.gmra.mxu2 %vm187_vm0, %v1105_v16  ;;  %1442 = vst.msk [vmem:[#allocation6 + $0xa8] sm:$0xff] %vm187_vm0, %v1105_v16  ;;  %1534 = vmatmul.msk.f32.vlgmr.msrb.gmra.mxu3 %vm187_vm0, %v1112_v57  ;;  %v2893_v27 = vor.u32 1.1754944e-38, %v997_v32  ;;  %vm744_vm12 = vcmp.eq.f32.partialorder %v743_v18, 8.507059e+37  ;;  %v948_v0 = vadd.f32 %v2544_v34, %v2643_v29 }
 0x239   :  { %v2854_v6 = vpop.xlane.xlu0 %634  ;;  %v1057_v53 = vmul.f32 %v2848_v47, %v2776_v11  ;;  %v2874_v28 = vpop.eup %1711  ;;  %1449 = vst.msk [vmem:[#allocation6 + $0xe0] sm:$0xff] %vm187_vm0, %v1112_v57  ;;  %vm963_vm13 = vweird.f32 %v2586_v58  ;;  %vm950_vm14 = vweird.f32 %v2544_v34  ;;  %v953_v57 = vand.u32 2147483647, %v2460_v7 }
 0x23a   :  { %1713 = vrcp.f32 %v2854_v6  ;;  %v2864_v39 = vpop.xlane.xlu2 %619  ;;  %v820_v50 = vsub.f32 1.0, %v819_v17  ;;  %v1081_v30 = vand.u32 2147483648, %v2854_v6  ;;  %v987_v37 = vmul.f32 %v2874_v28, %v2791_v44  ;;  %vm951_vm15 = vmor %vm949_vm7, %vm950_vm14 }
 0x23b   :  { %1715 = vrcp.f32 %v2864_v39  ;;  %v1058_v31 = vsub.f32 1.0, %v1057_v53  ;;  %v1011_v19 = vand.u32 2147483648, %v2864_v39  ;;  %v1079_v24 = vand.u32 2147483647, %v2854_v6 }
 0x23c   :  { %v821_v5 = vmul.f32 %v2841_v20, %v820_v50  ;;  %v2900_v1 = vor.u32 1.1754944e-38, %v1081_v30  ;;  %v747_v17 = vsel %vm744_vm12, %v2670_v43, %v742_v8  ;;  %v988_v29 = vsub.f32 1.0, %v987_v37 }
 0x23d   :  { %v1059_v16 = vmul.f32 %v2848_v47, %v1058_v31  ;;  %v1091_v32 = vmul.f32 %v747_v17, %v2000_v42  ;;  %v1046_v53 = vadd.f32 %v2769_v56, %v1045_v33  ;;  %vm1048_vm1 = vweird.f32 %v2769_v56 }
 0x23e   :  { %v1051_v43 = vand.u32 2147483647, %v2705_v22  ;;  %vm1061_vm2 = vweird.f32 %v2776_v11  ;;  %v2920_v50 = vor.u32 1.1754944e-38, %v1011_v19  ;;  %v952_v7 = vsel %vm951_vm15, %v2544_v34, %v948_v0  ;;  %vm1049_vm4 = vmor %vm1047_vm9, %vm1048_vm1 }
 0x23f   :  { %1428 = vst.msk [vmem:[#allocation6 + $0x38] sm:$0xff] %vm187_vm0, %v1091_v32  ;;  %vm954_vm3 = vcmp.eq.f32.partialorder %v953_v57, 8.507059e+37  ;;  %1513 = vmatmul.msk.f32.gmra.mxu1 %vm187_vm0, %v1091_v32  ;;  %v1050_v8 = vsel %vm1049_vm4, %v2769_v56, %v1046_v53  ;;  %vm767_vm6 = vweird.f32 %v2509_v54  ;;  %v2938_v19 = vadd.f32 %v2841_v20, %v821_v5 }
 0x240   :  { %v2908_v18 = vpop.eup %1713  ;;  %v957_v30 = vsel %vm954_vm3, %v2548_v40, %v952_v7  ;;  %vm1052_vm5 = vcmp.eq.f32.partialorder %v1051_v43, 8.507059e+37  ;;  %v2941_v0 = vmul.f32 %v2874_v28, %v988_v29  ;;  %vm1075_vm7 = vweird.f32 %v2854_v6 }
 0x241   :  { %v2915_v59 = vpop.eup %1715  ;;  %v1071_v42 = vmul.f32 %v2908_v18, %v2854_v6  ;;  %v1106_v34 = vmul.f32 %v957_v30, %v2233_v10  ;;  %v1055_v22 = vsel %vm1052_vm5, %v2799_v51, %v1050_v8  ;;  %vm977_vm8 = vweird.f32 %v2718_v13 }
 0x242   :  { %v1001_v33 = vmul.f32 %v2915_v59, %v2864_v39  ;;  %v2931_v31 = vpop.xlane.xlu2 %622  ;;  %v1113_v56 = vmul.f32 %v1055_v22, %v2316_v55  ;;  %vm1076_vm9 = vweird.f32 %v2908_v18  ;;  %v752_v10 = vadd.f32 %v2722_v36, %v2814_v61 }
 0x243   :  { %v1072_v37 = vsub.f32 1.0, %v1071_v42  ;;  %1717 = vrcp.f32 %v2931_v31  ;;  %1528 = vmatmul.msk.f32.gmra.mxu2 %vm187_vm0, %v1106_v34  ;;  %1443 = vst.msk [vmem:[#allocation6 + $0xb0] sm:$0xff] %vm187_vm0, %v1106_v34  ;;  %vm754_vm10 = vweird.f32 %v2722_v36  ;;  %vm2953_vm12 = vcmp.eq.f32.partialorder %v1079_v24, 8.507059e+37 }
 0x244   :  { %v1002_v40 = vsub.f32 1.0, %v1001_v33  ;;  %1535 = vmatmul.msk.f32.gmra.mxu3 %vm187_vm0, %v1113_v56  ;;  %1450 = vst.msk [vmem:[#allocation6 + $0xe8] sm:$0xff] %vm187_vm0, %v1113_v56  ;;  %v1023_v55 = vand.u32 2147483647, %v2931_v31  ;;  %v1025_v5 = vand.u32 2147483648, %v2931_v31  ;;  %vm755_vm14 = vmor %vm753_vm11, %vm754_vm10  ;;  %v962_v61 = vadd.f32 %v2640_v52, %v2750_v3 }
 0x245   :  { %v1073_v17 = vmul.f32 %v2908_v18, %v1072_v37  ;;  %v757_v32 = vand.u32 2147483647, %v2660_v41  ;;  %v756_v29 = vsel %vm755_vm14, %v2722_v36, %v752_v10  ;;  %vm964_vm15 = vweird.f32 %v2640_v52  ;;  %v3254_v10 = vld [vmem:[#allocation22_spill] sm:$0xff] }
 0x246   :  { %v2968_v57 = vmul.f32 %v2915_v59, %v1002_v40  ;;  %vm2974_vm3 = vmor %vm963_vm13, %vm964_vm15  ;;  %v967_v41 = vand.u32 2147483647, %v2586_v58  ;;  %v1060_v3 = vadd.f32 %v2848_v47, %v1059_v16  ;;  %vm1062_vm11 = vweird.f32 %v2848_v47  ;;  %v3250_v40 = vld [vmem:[#allocation19_spill] sm:$0xff] }
 0x247   :  { %v1074_v24 = vadd.f32 %v2908_v18, %v1073_v17  ;;  %vm758_vm1 = vcmp.eq.f32.partialorder %v757_v32, 8.507059e+37  ;;  %vm781_vm4 = vweird.f32 %v2584_v14  ;;  %v966_v42 = vsel %vm2974_vm3, %v2640_v52, %v962_v61  ;;  %vm1063_vm14 = vmor %vm1061_vm2, %vm1062_vm11 }
 0x248   :  { %v761_v36 = vsel %vm758_vm1, %v2760_v21, %v756_v29  ;;  %v1065_v7 = vand.u32 2147483647, %v2776_v11  ;;  %v766_v33 = vadd.f32 %v2577_v38, %v2685_v49  ;;  %v2995_v16 = vor.u32 1.1754944e-38, %v1025_v5  ;;  %vm3021_vm11 = vmor %vm1075_vm7, %vm1076_vm9 }
 0x249   :  { %v2981_v43 = vpop.eup %1717  ;;  %v1092_v21 = vmul.f32 %v761_v36, %v2163_v60  ;;  %vm968_vm10 = vcmp.eq.f32.partialorder %v967_v41, 8.507059e+37  ;;  %vm795_vm15 = vweird.f32 %v2646_v25  ;;  %v1064_v49 = vsel %vm1063_vm14, %v2848_v47, %v1060_v3  ;;  %v3263_v36 = vld [vmem:[#allocation11_spill] sm:$0xff] }
 0x24a   :  { %v1015_v58 = vmul.f32 %v2981_v43, %v2931_v31  ;;  %vm1020_vm1 = vweird.f32 %v2981_v43  ;;  %v971_v52 = vsel %vm968_vm10, %v2730_v45, %v966_v42  ;;  %vm1066_vm3 = vcmp.eq.f32.partialorder %v1065_v7, 8.507059e+37 }
 0x24b   :  { %vm768_vm13 = vweird.f32 %v2577_v38  ;;  %vm823_vm5 = vweird.f32 %v2774_v23  ;;  %1514 = vmatmul.msk.f32.gmra.mxu1 %vm187_vm0, %v1092_v21  ;;  %1429 = vst.msk [vmem:[#allocation6 + $0x40] sm:$0xff] %vm187_vm0, %v1092_v21  ;;  %v1107_v60 = vmul.f32 %v971_v52, %v2210_v46  ;;  %v1069_v11 = vsel %vm1066_vm3, %v2887_v9, %v1064_v49  ;;  %v3268_v21 = vld [vmem:[#allocation12_spill] sm:$0xff]  ;;  %v3269_v52 = vld [vmem:[#allocation27_spill] sm:$0xff] }
 0x24c   :  { %v1016_v30 = vsub.f32 1.0, %v1015_v58  ;;  %vm3012_vm2 = vmor %vm767_vm6, %vm768_vm13  ;;  %v771_v47 = vand.u32 2147483647, %v2509_v54  ;;  %vm1019_vm10 = vweird.f32 %v2931_v31  ;;  %v1114_v46 = vmul.f32 %v1069_v11, %v2342_v2  ;;  %v3270_v49 = vld [vmem:[#allocation24_spill] sm:$0xff] }
 0x24d   :  { %v770_v9 = vsel %vm3012_vm2, %v2577_v38, %v766_v33  ;;  %v976_v37 = vadd.f32 %v2780_v63, %v2885_v35  ;;  %vm978_vm6 = vweird.f32 %v2780_v63  ;;  %vm1005_vm13 = vweird.f32 %v2864_v39  ;;  %1529 = vmatmul.msk.f32.gmra.mxu2 %vm187_vm0, %v1107_v60  ;;  %1444 = vst.msk [vmem:[#allocation6 + $0xb8] sm:$0xff] %vm187_vm0, %v1107_v60  ;;  %v3267_v33 = vld [vmem:[#allocation23_spill] sm:$0xff] }
 0x24e   :  { %v1017_v54 = vmul.f32 %v2981_v43, %v1016_v30  ;;  %vm772_vm7 = vcmp.eq.f32.partialorder %v771_v47, 8.507059e+37  ;;  %vm3039_vm9 = vmor %vm977_vm8, %vm978_vm6  ;;  %v981_v38 = vand.u32 2147483647, %v2718_v13  ;;  %v1078_v6 = vsel %vm3021_vm11, %v2908_v18, %v1074_v24  ;;  %1536 = vmatmul.msk.f32.gmra.mxu3 %vm187_vm0, %v1114_v46  ;;  %1451 = vst.msk [vmem:[#allocation6 + $0xf0] sm:$0xff] %vm187_vm0, %v1114_v46  ;;  %v3257_v24 = vld [vmem:[#allocation21_spill] sm:$0xff] }
 0x24f   :  { %v775_v35 = vsel %vm772_vm7, %v2633_v48, %v770_v9  ;;  %v980_v34 = vsel %vm3039_vm9, %v2780_v63, %v976_v37  ;;  %v1083_v13 = vsel %vm2953_vm12, %v2900_v1, %v1078_v6  ;;  %vm782_vm8 = vweird.f32 %v2631_v26  ;;  %v3273_v9 = vld [vmem:[#allocation26_spill] sm:$0xff]  ;;  %v3274_v37 = vld [vmem:[#allocation17_spill] sm:$0xff] }
 0x250   :  { %v1018_v18 = vadd.f32 %v2981_v43, %v1017_v54  ;;  %vm3061_vm3 = vcmp.eq.f32.partialorder %v1023_v55, 8.507059e+37  ;;  %v1093_v48 = vmul.f32 %v775_v35, %v2154_v62  ;;  %vm982_vm2 = vcmp.eq.f32.partialorder %v981_v38, 8.507059e+37  ;;  %v3255_v62 = vld [vmem:[#allocation18_spill] sm:$0xff]  ;;  %vm783_vm12 = vmor %vm781_vm4, %vm782_vm8 }
 0x251   :  { %v1115_v56 = vmul.f32 %v1083_v13, %v3250_v40  ;;  %v3251_v63 = vand.u32 2147483647, %v2774_v23  ;;  %v985_v1 = vsel %vm982_vm2, %v2803_v15, %v980_v34  ;;  %v780_v51 = vadd.f32 %v2631_v26, %v3254_v10  ;;  %v3256_v15 = vld [vmem:[#allocation25_spill] sm:$0xff]  ;;  %v3266_v23 = vld [vmem:[#allocation15_spill] sm:$0xff] }
 0x252   :  { %v785_v55 = vand.u32 2147483647, %v2584_v14  ;;  %v990_v5 = vadd.f32 %v2874_v28, %v2941_v0  ;;  %1430 = vst.msk [vmem:[#allocation6 + $0x48] sm:$0xff] %vm187_vm0, %v1093_v48  ;;  %v1108_v32 = vmul.f32 %v985_v1, %v3255_v62  ;;  %vm992_vm6 = vweird.f32 %v2874_v28  ;;  %v3259_v0 = vld [vmem:[#allocation20_spill] sm:$0xff] }
 0x253   :  { %vm3069_vm11 = vcmp.eq.f32.partialorder %v3251_v63, 8.507059e+37  ;;  %v995_v61 = vand.u32 2147483647, %v2791_v44  ;;  %v794_v29 = vadd.f32 %v3257_v24, %v3256_v15  ;;  %1452 = vst.msk [vmem:[#allocation6 + $0xf8] sm:$0xff] %vm187_vm0, %v1115_v56  ;;  %v784_v53 = vsel %vm783_vm12, %v2631_v26, %v780_v51  ;;  %1515 = vmatmul.msk.f32.gmra.mxu1 %vm187_vm0, %v1093_v48 }
 0x254   :  { %vm786_vm7 = vcmp.eq.f32.partialorder %v785_v55, 8.507059e+37  ;;  %vm3258_vm9 = vweird.f32 %v2791_v44  ;;  %vm796_vm14 = vweird.f32 %v3257_v24  ;;  %v799_v14 = vand.u32 2147483647, %v2646_v25  ;;  %1445 = vst.msk [vmem:[#allocation6 + $0xc0] sm:$0xff] %vm187_vm0, %v1108_v32 }
 0x255   :  { %vm993_vm2 = vmor %vm3258_vm9, %vm992_vm6  ;;  %v789_v41 = vsel %vm786_vm7, %v3259_v0, %v784_v53  ;;  %vm996_vm4 = vcmp.eq.f32.partialorder %v995_v61, 8.507059e+37  ;;  %v1004_v26 = vadd.f32 %v2915_v59, %v2968_v57  ;;  %vm3260_vm12 = vweird.f32 %v2841_v20  ;;  %1530 = vmatmul.msk.f32.gmra.mxu2 %vm187_vm0, %v1108_v32 }
 0x256   :  { %v994_v3 = vsel %vm993_vm2, %v2874_v28, %v990_v5  ;;  %vm797_vm8 = vmor %vm795_vm15, %vm796_vm14  ;;  %v1094_v42 = vmul.f32 %v789_v41, %v3263_v36  ;;  %vm800_vm7 = vcmp.eq.f32.partialorder %v799_v14, 8.507059e+37  ;;  %1537 = vmatmul.msk.f32.gmra.mxu3 %vm187_vm0, %v1115_v56  ;;  %v808_v30 = vadd.f32 %v3270_v49, %v3269_v52 }
 0x257   :  { %vm3105_vm6 = vmor %vm823_vm5, %vm3260_vm12  ;;  %v999_v7 = vsel %vm996_vm4, %v2893_v27, %v994_v3  ;;  %v798_v28 = vsel %vm797_vm8, %v3257_v24, %v794_v29  ;;  %vm1006_vm5 = vweird.f32 %v2915_v59  ;;  %v1009_v27 = vand.u32 2147483647, %v2864_v39 }
 0x258   :  { %vm3116_vm15 = vmor %vm1019_vm10, %vm1020_vm1  ;;  %v1109_v57 = vmul.f32 %v999_v7, %v3266_v23  ;;  %v803_v58 = vsel %vm800_vm7, %v3267_v33, %v798_v28  ;;  %1431 = vst.msk [vmem:[#allocation6 + $0x50] sm:$0xff] %vm187_vm0, %v1094_v42  ;;  %vm810_vm10 = vweird.f32 %v3270_v49  ;;  %v813_v60 = vand.u32 2147483647, %v2703_v4 }
 0x259   :  { %v1095_v31 = vmul.f32 %v803_v58, %v3268_v21  ;;  %vm1007_vm1 = vmor %vm1005_vm13, %vm1006_vm5  ;;  %vm1010_vm14 = vcmp.eq.f32.partialorder %v1009_v27, 8.507059e+37  ;;  %vm3271_vm9 = vweird.f32 %v2703_v4  ;;  %v1022_v39 = vsel %vm3116_vm15, %v2981_v43, %v1018_v18 }
 0x25a   :  { %1446 = vst.msk [vmem:[#allocation6 + $0xc8] sm:$0xff] %vm187_vm0, %v1109_v57  ;;  %v1008_v11 = vsel %vm1007_vm1, %v2915_v59, %v1004_v26  ;;  %vm811_vm2 = vmor %vm3271_vm9, %vm810_vm10  ;;  %v826_v45 = vsel %vm3105_vm6, %v2841_v20, %v2938_v19  ;;  %vm814_vm13 = vcmp.eq.f32.partialorder %v813_v60, 8.507059e+37  ;;  %v1027_v4 = vsel %vm3061_vm3, %v2995_v16, %v1022_v39  ;;  %v3272_v59 = vld [vmem:[#allocation16_spill] sm:$0xff]  ;;  %v3275_v19 = vld [vmem:[#allocation13_spill] sm:$0xff] }
 0x25b   :  { %1432 = vst.msk [vmem:[#allocation6 + $0x58] sm:$0xff] %vm187_vm0, %v1095_v31  ;;  %v1013_v47 = vsel %vm1010_vm14, %v2920_v50, %v1008_v11  ;;  %v812_v8 = vsel %vm811_vm2, %v3270_v49, %v808_v30  ;;  %v1111_v54 = vmul.f32 %v1027_v4, %v3274_v37  ;;  %v831_v20 = vsel %vm3069_vm11, %v2858_v12, %v826_v45  ;;  %v3276_v50 = vld [vmem:[#allocation14_spill] sm:$0xff] }
 0x25c   :  { %v1110_v46 = vmul.f32 %v1013_v47, %v3272_v59  ;;  %v817_v43 = vsel %vm814_vm13, %v3273_v9, %v812_v8  ;;  %v1097_v38 = vmul.f32 %v831_v20, %v3276_v50  ;;  %1516 = vmatmul.msk.f32.gmra.mxu1 %vm187_vm0, %v1094_v42 }
 0x25d   :  { %v1096_v2 = vmul.f32 %v817_v43, %v3275_v19  ;;  %1531 = vmatmul.msk.f32.gmra.mxu2 %vm187_vm0, %v1109_v57  ;;  %1448 = vst.msk [vmem:[#allocation6 + $0xd8] sm:$0xff] %vm187_vm0, %v1111_v54 }
 0x25e   :  { %1447 = vst.msk [vmem:[#allocation6 + $0xd0] sm:$0xff] %vm187_vm0, %v1110_v46 }
 0x25f   :  { %1433 = vst.msk [vmem:[#allocation6 + $0x60] sm:$0xff] %vm187_vm0, %v1096_v2 }
 0x260   :  { %1434 = vst.msk [vmem:[#allocation6 + $0x68] sm:$0xff] %vm187_vm0, %v1097_v38 }
 0x261   :  { %1478 = dma.vmem_to_hbm [thread:$0]  %s1471_s16, 4096, %s1473_s19, [#allocation7], %s1798_s20, %s1798_s20, %s1799_s21  }
 0x264   :  { %1517 = vmatmul.msk.f32.gmra.mxu1 %vm187_vm0, %v1095_v31 }
 0x265   :  { %1532 = vmatmul.msk.f32.gmra.mxu2 %vm187_vm0, %v1110_v46 }
 0x26c   :  { %1518 = vmatmul.msk.f32.gmra.mxu1 %vm187_vm0, %v1096_v2 }
 0x26d   :  { %1533 = vmatmul.msk.f32.gmra.mxu2 %vm187_vm0, %v1111_v54 }
 0x272   :  { %v1335_v12 = vpop.f32.mrf.mxu2 }
 0x273   :  { %1403 = vst [vmem:[#allocation5 + $0x70] sm:$0xff] %v1335_v12 }
 0x274   :  { %1519 = vmatmul.msk.f32.gmra.mxu1 %vm187_vm0, %v1097_v38  ;;  %v1293_v16 = vpop.f32.mrf.mxu1 }
 0x275   :  { %1389 = vst [vmem:[#allocation5] sm:$0xff] %v1293_v16 }
 0x27a   :  { %v1338_v6 = vpop.f32.mrf.mxu2 }
 0x27b   :  { %1404 = vst [vmem:[#allocation5 + $0x78] sm:$0xff] %v1338_v6 }
 0x27c   :  { %v1296_v35 = vpop.f32.mrf.mxu1 }
 0x27d   :  { %1390 = vst [vmem:[#allocation5 + $0x8] sm:$0xff] %v1296_v35 }
 0x291   :  { %v1341_v34 = vpop.f32.mrf.mxu2 }
 0x292   :  { %1405 = vst [vmem:[#allocation5 + $0x80] sm:$0xff] %v1341_v34 }
 0x294   :  { %v1299_v13 = vpop.f32.mrf.mxu1 }
 0x295   :  { %1391 = vst [vmem:[#allocation5 + $0x10] sm:$0xff] %v1299_v13 }
 0x299   :  { %v1344_v18 = vpop.f32.mrf.mxu2 }
 0x29a   :  { %1406 = vst [vmem:[#allocation5 + $0x88] sm:$0xff] %v1344_v18 }
 0x29c   :  { %v1302_v22 = vpop.f32.mrf.mxu1 }
 0x29d   :  { %1392 = vst [vmem:[#allocation5 + $0x18] sm:$0xff] %v1302_v22 }
 0x2a1   :  { %v1347_v48 = vpop.f32.mrf.mxu2 }
 0x2a2   :  { %1407 = vst [vmem:[#allocation5 + $0x90] sm:$0xff] %v1347_v48 }
 0x2a4   :  { %v1305_v40 = vpop.f32.mrf.mxu1 }
 0x2a5   :  { %1393 = vst [vmem:[#allocation5 + $0x20] sm:$0xff] %v1305_v40 }
 0x2a9   :  { %v1350_v56 = vpop.f32.mrf.mxu2 }
 0x2aa   :  { %1408 = vst [vmem:[#allocation5 + $0x98] sm:$0xff] %v1350_v56 }
 0x2ac   :  { %v1308_v63 = vpop.f32.mrf.mxu1 }
 0x2ad   :  { %1394 = vst [vmem:[#allocation5 + $0x28] sm:$0xff] %v1308_v63 }
 0x2b1   :  { %v1353_v17 = vpop.f32.mrf.mxu2 }
 0x2b2   :  { %1409 = vst [vmem:[#allocation5 + $0xa0] sm:$0xff] %v1353_v17 }
 0x2b4   :  { %v1311_v1 = vpop.f32.mrf.mxu1 }
 0x2b5   :  { %1395 = vst [vmem:[#allocation5 + $0x30] sm:$0xff] %v1311_v1 }
 0x2bb   :  { %v1356_v10 = vpop.f32.mrf.mxu2  ;;  %v1377_v51 = vpop.f32.mrf.mxu3 }
 0x2bc   :  { %1410 = vst [vmem:[#allocation5 + $0xa8] sm:$0xff] %v1356_v10  ;;  %v1314_v55 = vpop.f32.mrf.mxu1 }
 0x2bd   :  { %1417 = vst [vmem:[#allocation5 + $0xe0] sm:$0xff] %v1377_v51 }
 0x2be   :  { %1396 = vst [vmem:[#allocation5 + $0x38] sm:$0xff] %v1314_v55 }
 0x2c6   :  { %v1359_v5 = vpop.f32.mrf.mxu2 }
 0x2c7   :  { %1411 = vst [vmem:[#allocation5 + $0xb0] sm:$0xff] %v1359_v5  ;;  %v1380_v62 = vpop.f32.mrf.mxu3 }
 0x2c8   :  { %v1317_v32 = vpop.f32.mrf.mxu1  ;;  %1418 = vst [vmem:[#allocation5 + $0xe8] sm:$0xff] %v1380_v62 }
 0x2c9   :  { %1397 = vst [vmem:[#allocation5 + $0x40] sm:$0xff] %v1317_v32 }
 0x2d0   :  { %v1362_v61 = vpop.f32.mrf.mxu2  ;;  %v1320_v15 = vpop.f32.mrf.mxu1 }
 0x2d1   :  { %1412 = vst [vmem:[#allocation5 + $0xb8] sm:$0xff] %v1362_v61  ;;  %v1383_v24 = vpop.f32.mrf.mxu3 }
 0x2d2   :  { %1419 = vst [vmem:[#allocation5 + $0xf0] sm:$0xff] %v1383_v24 }
 0x2d3   :  { %1398 = vst [vmem:[#allocation5 + $0x48] sm:$0xff] %v1320_v15 }
 0x2d8   :  { %v1365_v29 = vpop.f32.mrf.mxu2 }
 0x2d9   :  { %v1323_v53 = vpop.f32.mrf.mxu1  ;;  %1413 = vst [vmem:[#allocation5 + $0xc0] sm:$0xff] %v1365_v29  ;;  %v1386_v14 = vpop.f32.mrf.mxu3 }
 0x2da   :  { %1420 = vst [vmem:[#allocation5 + $0xf8] sm:$0xff] %v1386_v14 }
 0x2db   :  { %1399 = vst [vmem:[#allocation5 + $0x50] sm:$0xff] %v1323_v53 }
 0x2e0   :  { %v1368_v0 = vpop.f32.mrf.mxu2 }
 0x2e1   :  { %v1326_v41 = vpop.f32.mrf.mxu1  ;;  %1414 = vst [vmem:[#allocation5 + $0xc8] sm:$0xff] %v1368_v0 }
 0x2e2   :  { %1400 = vst [vmem:[#allocation5 + $0x58] sm:$0xff] %v1326_v41 }
 0x2e8   :  { %v1371_v3 = vpop.f32.mrf.mxu2 }
 0x2e9   :  { %v1329_v26 = vpop.f32.mrf.mxu1  ;;  %1415 = vst [vmem:[#allocation5 + $0xd0] sm:$0xff] %v1371_v3 }
 0x2ea   :  { %1401 = vst [vmem:[#allocation5 + $0x60] sm:$0xff] %v1329_v26 }
 0x2f0   :  { %v1374_v44 = vpop.f32.mrf.mxu2 }
 0x2f1   :  { %v1332_v36 = vpop.f32.mrf.mxu1  ;;  %1416 = vst [vmem:[#allocation5 + $0xd8] sm:$0xff] %v1374_v44 }
 0x2f2   :  { %1402 = vst [vmem:[#allocation5 + $0x68] sm:$0xff] %v1332_v36 }
 0x2f3   :  { %1465 = dma.vmem_to_hbm [thread:$0]  %s1458_s22, 4096, %s1460_s0, [#allocation4], %s1798_s20, %s1798_s20, %s1799_s21  }
 0x2f4   :  { %1793 = dma.done.wait [#allocation4], 4096  }
 0x2f5   :  { %1794 = vsyncadd [#allocation4], 4294963200 }
 0x2f6   :  { %1795 = dma.done.wait [#allocation7], 4096  }
 0x2f7   :  { %1796 = vsyncadd [#allocation7], 4294963200 }
 0x2f8   :  { %1487 = vsyncpa [#allocation3], 1 }
 0x2f9   :  { %1488 = vsyncpa [#allocation4], 1 }
 0x2fa   :  { %1489 = vsyncpa [#allocation7], 1 }

</bundles_post_ra>
